<compile_context>
chip_gen: v5e
topology: v5e:2x2
jax: 0.10.0
libtpu: 0.0.40
codegen_flags: <defaults>
</compile_context>

<pallas_src>
import jax
import jax.numpy as jnp
from jax.experimental import pallas as pl
from jax.experimental.pallas import tpu as pltpu

# ---- model constants -------------------------------------------------------------------------
D_MODEL = 64
NHEAD = 4
HEAD_DIM = D_MODEL // NHEAD
NUM_LAYERS = 2
DIM_FF = D_MODEL * 4          # 256
VOCAB_SIZE = 16               # synthetic tokenizer vocab
N_ACTIONS = VOCAB_SIZE - 2    # 14
MAX_SEQ_LEN = 100
LN_EPS = 1e-5
NEG_INF = -1e9
DP = 128                      # padded lane width for activations / weight blocks

# ---- packed-weight slab layout ----------------------------------------------------------------
# w_slab: 17 blocks of (128, 128) bf16 stacked along rows -> (2176, 128)
WQ, WK, WV, WO, W1A, W1B, W2A, W2B = range(8)
WBLOCKS_PER_LAYER = 8
W_HEAD = NUM_LAYERS * WBLOCKS_PER_LAYER          # block index of the fused action+value head

# misc: (40, 128) f32, one parameter row each
R_BQ, R_BK, R_BV, R_BO = 0, 1, 2, 3
R_LN1W, R_LN1B = 4, 5
R_CROSS = 6
R_LN2W, R_LN2B = 7, 8
R_B1A, R_B1B, R_B2 = 9, 10, 11
R_LN3W, R_LN3B = 12, 13
MISC_PER_LAYER = 16
R_BH = NUM_LAYERS * MISC_PER_LAYER               # 32: fused head bias
R_HM = R_BH + 1                                  # 33..36: per-head 0/1 lane masks


def _layer_norm(x, w, b):
    # PyTorch LayerNorm (biased variance, eps=1e-5, affine), over the REAL d_model=64 columns.
    # x is (rows, 128) with columns [64:128) guaranteed zero, so plain sums already equal sums
    # over the real columns; divide by D_MODEL and use var = E[x^2] - mean^2 (no mask needed).
    # w/b are zero-padded past d_model, so padded output columns stay exactly 0.
    inv_d = 1.0 / D_MODEL
    mean = jnp.sum(x, axis=-1, keepdims=True) * inv_d
    ex2 = jnp.sum(x * x, axis=-1, keepdims=True) * inv_d
    var = jnp.maximum(ex2 - mean * mean, 0.0)
    return (x - mean) * jax.lax.rsqrt(var + LN_EPS) * w + b


def fused_forward_kernel(x_ref, mask_ref, w_ref, misc_ref, out_ref):
    x = x_ref[...]          # (BT, 128) f32, cols >= D_MODEL are zero
    mask = mask_ref[...]    # (BT, BT) f32 additive mask (batch-block-diag + causal + padding)

    def wblk(b):            # tile-aligned 128x128 bf16 weight block (static row offset)
        r = b * DP
        return w_ref[r:r + DP, :]

    def mrow(r):            # one (1, 128) f32 parameter row (static offset)
        return misc_ref[r:r + 1, :]

    head_masks = [mrow(R_HM + h) for h in range(NHEAD)]   # hoisted: 0/1 lane masks per head

    for l in range(NUM_LAYERS):                 # static unroll (NUM_LAYERS == 2)
        wb = l * WBLOCKS_PER_LAYER
        mb = l * MISC_PER_LAYER

        # ---- self-attention ----------------------------------------------------------------
        xb = x.astype(jnp.bfloat16)
        # 1/sqrt(head_dim) is folded into Wq / bq at pack time.
        q = jnp.dot(xb, wblk(wb + WQ), preferred_element_type=jnp.float32) + mrow(mb + R_BQ)
        k = jnp.dot(xb, wblk(wb + WK), preferred_element_type=jnp.float32) + mrow(mb + R_BK)
        v = jnp.dot(xb, wblk(wb + WV), preferred_element_type=jnp.float32) + mrow(mb + R_BV)
        kb = k.astype(jnp.bfloat16)

        ctx = jnp.zeros_like(x)                 # (BT, 128)
        for h in range(NHEAD):                  # tiny static loop; head isolation via lane masks
            hm = head_masks[h]
            s = jnp.einsum('qd,kd->qk', (q * hm).astype(jnp.bfloat16), kb,
                           preferred_element_type=jnp.float32) + mask        # (BT, BT)
            s = s - jnp.max(s, axis=-1, keepdims=True)
            p = jnp.exp(s)
            p = p * pl.reciprocal(jnp.sum(p, axis=-1, keepdims=True), approx=True)
            ctx = ctx + jnp.dot(p.astype(jnp.bfloat16), (v * hm).astype(jnp.bfloat16),
                                preferred_element_type=jnp.float32)
        attn = jnp.dot(ctx.astype(jnp.bfloat16), wblk(wb + WO),
                       preferred_element_type=jnp.float32) + mrow(mb + R_BO)
        x = _layer_norm(x + attn, mrow(mb + R_LN1W), mrow(mb + R_LN1B))

        # ---- cross-attention vs. the all-zeros memory: precomputed constant row (exact) -----
        x = _layer_norm(x + mrow(mb + R_CROSS), mrow(mb + R_LN2W), mrow(mb + R_LN2B))

        # ---- feed-forward (ReLU); dim_ff=256 split into two lane-dense 128 halves -----------
        xb2 = x.astype(jnp.bfloat16)
        h1a = jnp.maximum(jnp.dot(xb2, wblk(wb + W1A), preferred_element_type=jnp.float32)
                          + mrow(mb + R_B1A), 0.0)
        h1b = jnp.maximum(jnp.dot(xb2, wblk(wb + W1B), preferred_element_type=jnp.float32)
                          + mrow(mb + R_B1B), 0.0)
        h2 = (jnp.dot(h1a.astype(jnp.bfloat16), wblk(wb + W2A), preferred_element_type=jnp.float32)
              + jnp.dot(h1b.astype(jnp.bfloat16), wblk(wb + W2B), preferred_element_type=jnp.float32)
              + mrow(mb + R_B2))
        x = _layer_norm(x + h2, mrow(mb + R_LN3W), mrow(mb + R_LN3B))

    # ---- fused action + value head, 128-lane-dense output store ------------------------------
    out_ref[...] = (jnp.dot(x.astype(jnp.bfloat16), wblk(W_HEAD),
                            preferred_element_type=jnp.float32) + mrow(R_BH))


def policy_forward(packed, input_ids, attention_mask=None):
    """Equivalent of PolicyModel.forward: returns (action_logits (B,S,V-2), values (B,S))."""
    B, S = input_ids.shape
    BT = B * S

    # --- plain-JAX glue: embedding gather + positional embedding (tables pre-padded to 128) ---
    x = jnp.take(packed['embedding'], input_ids, axis=0)          # (B, S, 128)
    x = x + packed['pos_embedding'][:, :S, :]
    x2d = x.reshape(BT, DP)

    # --- one combined additive mask over the flattened (B*S, B*S) score matrix ---------------
    q_idx = jnp.arange(BT)
    qb, qs = q_idx // S, q_idx % S
    causal = jnp.where(qs[None, :] > qs[:, None], NEG_INF, 0.0)          # key after query
    batch_blk = jnp.where(qb[:, None] == qb[None, :], 0.0, NEG_INF)      # block-diagonal per batch
    if attention_mask is None:
        pad = jnp.zeros((B, S), jnp.float32)
    else:
        pad = attention_mask.astype(jnp.float32)                          # additive float mask
    mask = (causal + batch_blk + pad.reshape(1, BT)).astype(jnp.float32)  # (BT, BT)

    out = pl.pallas_call(
        fused_forward_kernel,
        out_shape=jax.ShapeDtypeStruct((BT, DP), jnp.float32),
        grid=(1,),                                            # single program: whole batch at once
        in_specs=[
            pl.BlockSpec((BT, DP), lambda i: (0, 0)),
            pl.BlockSpec((BT, BT), lambda i: (0, 0)),
            pl.BlockSpec(packed['w_slab'].shape, lambda i: (0, 0)),
            pl.BlockSpec(packed['misc'].shape, lambda i: (0, 0)),
        ],
        out_specs=pl.BlockSpec((BT, DP), lambda i: (0, 0)),
        compiler_params=pltpu.CompilerParams(dimension_semantics=("arbitrary",)),
    )(x2d, mask, packed['w_slab'], packed['misc'])

    out = out.reshape(B, S, DP)
    logits = out[..., :N_ACTIONS]
    values = out[..., N_ACTIONS]
    return logits, values


# ------------------------------------ parameters ----------------------------------------------
def init_params(key, vocab_size):
    keys = iter(jax.random.split(key, 64))

    def dense(shape, scale=0.05):
        return (scale * jax.random.normal(next(keys), shape)).astype(jnp.float32)

    params = {
        'embedding': dense((vocab_size, D_MODEL), scale=1.0),   # nn.Embedding ~ N(0,1)
        'pos_embedding': jnp.zeros((1, MAX_SEQ_LEN, D_MODEL), jnp.float32),
        'layers': [],
    }
    for _ in range(NUM_LAYERS):
        lp = dict(
            sa_wq=dense((D_MODEL, D_MODEL)), sa_wk=dense((D_MODEL, D_MODEL)),
            sa_wv=dense((D_MODEL, D_MODEL)),
            sa_bq=dense((1, D_MODEL)), sa_bk=dense((1, D_MODEL)), sa_bv=dense((1, D_MODEL)),
            sa_wo=dense((D_MODEL, D_MODEL)), sa_bo=dense((1, D_MODEL)),
            # cross-attention: only b_v, Wo, b_o affect the output (memory == 0, 1 token)
            ca_bv=dense((1, D_MODEL)), ca_wo=dense((D_MODEL, D_MODEL)), ca_bo=dense((1, D_MODEL)),
            ln1_w=jnp.ones((1, D_MODEL), jnp.float32), ln1_b=jnp.zeros((1, D_MODEL), jnp.float32),
            ln2_w=jnp.ones((1, D_MODEL), jnp.float32), ln2_b=jnp.zeros((1, D_MODEL), jnp.float32),
            ln3_w=jnp.ones((1, D_MODEL), jnp.float32), ln3_b=jnp.zeros((1, D_MODEL), jnp.float32),
            ff_w1=dense((D_MODEL, DIM_FF)), ff_b1=dense((1, DIM_FF)),
            ff_w2=dense((DIM_FF, D_MODEL)), ff_b2=dense((1, D_MODEL)),
        )
        params['layers'].append(lp)
    params['wa'] = dense((D_MODEL, vocab_size - 2))
    params['ba'] = dense((1, vocab_size - 2))
    params['wv_row'] = dense((1, D_MODEL))
    params['bv'] = dense((1, 1))
    return params


def pack_params(params):
    """One-time repack: all matmul weights -> one bf16 (2176,128) slab of zero-padded 128x128
    blocks; all biases / LN params / cross constants / head masks -> one f32 (40,128) slab;
    1/sqrt(head_dim) folded into Wq/bq; cross-attn constant folded; embedding / pos tables padded
    to 128 lanes so in-kernel activations stay lane-dense with a zero-padding invariant."""
    layers = params['layers']
    scale = 1.0 / (HEAD_DIM ** 0.5)

    def padded_block(w):
        blk = jnp.zeros((DP, DP), jnp.float32)
        return blk.at[:w.shape[0], :w.shape[1]].set(w)

    def padded_row(v):
        v = jnp.reshape(v, (-1,))
        r = jnp.zeros((DP,), jnp.float32)
        return r.at[:v.shape[0]].set(v)

    wblocks, mrows = [], []
    for lp in layers:
        wblocks += [
            padded_block(lp['sa_wq'] * scale),          # WQ  (scale folded in)
            padded_block(lp['sa_wk']),                  # WK
            padded_block(lp['sa_wv']),                  # WV
            padded_block(lp['sa_wo']),                  # WO
            padded_block(lp['ff_w1'][:, :DP]),          # W1A
            padded_block(lp['ff_w1'][:, DP:]),          # W1B
            padded_block(lp['ff_w2'][:DP, :]),          # W2A
            padded_block(lp['ff_w2'][DP:, :]),          # W2B
        ]
        # cross-attention output is input-independent: softmax over one zero-key is 1 and V == b_v
        cross = lp['ca_bv'] @ lp['ca_wo'] + lp['ca_bo']
        lrows = [
            padded_row(lp['sa_bq'] * scale), padded_row(lp['sa_bk']),
            padded_row(lp['sa_bv']), padded_row(lp['sa_bo']),
            padded_row(lp['ln1_w']), padded_row(lp['ln1_b']),
            padded_row(cross),
            padded_row(lp['ln2_w']), padded_row(lp['ln2_b']),
            padded_row(lp['ff_b1'][0, :DP]), padded_row(lp['ff_b1'][0, DP:]),
            padded_row(lp['ff_b2']),
            padded_row(lp['ln3_w']), padded_row(lp['ln3_b']),
        ]
        lrows += [jnp.zeros((DP,), jnp.float32)] * (MISC_PER_LAYER - len(lrows))
        mrows += lrows

    # fused action + value head, zero-padded to 128 output lanes (lane-dense store)
    wh = jnp.concatenate([params['wa'], params['wv_row'].T], axis=1)     # (D, N_ACTIONS+1)
    bh = jnp.concatenate([params['ba'], params['bv']], axis=1)           # (1, N_ACTIONS+1)
    wblocks.append(padded_block(wh))
    mrows.append(padded_row(bh))
    for h in range(NHEAD):                                               # per-head 0/1 lane masks
        hm = jnp.zeros((DP,), jnp.float32).at[h * HEAD_DIM:(h + 1) * HEAD_DIM].set(1.0)
        mrows.append(hm)
    while len(mrows) % 8 != 0:
        mrows.append(jnp.zeros((DP,), jnp.float32))

    emb = jnp.zeros((params['embedding'].shape[0], DP), jnp.float32)
    emb = emb.at[:, :D_MODEL].set(params['embedding'])
    pos = jnp.zeros((1, MAX_SEQ_LEN, DP), jnp.float32)
    pos = pos.at[:, :, :D_MODEL].set(params['pos_embedding'])

    return dict(
        embedding=emb,
        pos_embedding=pos,
        w_slab=jnp.stack(wblocks, 0).reshape(-1, DP).astype(jnp.bfloat16),   # (2176, 128)
        misc=jnp.stack(mrows, 0),                                            # (40, 128) f32
    )


if __name__ == "__main__":
    key = jax.random.PRNGKey(0)
    pkey, dkey = jax.random.split(key)
    params = init_params(pkey, VOCAB_SIZE)
    packed = pack_params(params)

    B, S = 2, 8
    input_ids = jax.random.randint(dkey, (B, S), 0, VOCAB_SIZE, dtype=jnp.int32)
    attention_mask = jnp.zeros((B, S), jnp.float32)   # same as sample_actions()

    fwd = jax.jit(policy_forward)
    logits, values = fwd(packed, input_ids, attention_mask)
    jax.block_until_ready((logits, values))

    assert logits.shape == (B, S, N_ACTIONS), logits.shape
    assert values.shape == (B, S), values.shape
    assert bool(jnp.all(jnp.isfinite(logits))) and bool(jnp.all(jnp.isfinite(values)))
    print("KERNEL_OK")
</pallas_src>

<mosaic_0001>
module attributes {stable_mosaic.version = 11 : i64} {
  func.func @fused_forward_kernel(%arg0: i32, %arg1: memref<16x128xf32, #tpu.memory_space<vmem>>, %arg2: memref<16x16xf32, #tpu.memory_space<vmem>>, %arg3: memref<2176x128xbf16, #tpu.memory_space<vmem>>, %arg4: memref<40x128xf32, #tpu.memory_space<vmem>>, %arg5: memref<16x128xf32, #tpu.memory_space<vmem>>) attributes {dimension_semantics = [#tpu.dimension_semantics<arbitrary>], iteration_bounds = array<i64: 1>, scalar_prefetch = 0 : i64, scratch_operands = 0 : i64, tpu.core_type = #tpu.core_type<tc>, window_params = [{pipeline_mode = #tpu.pipeline_mode<synchronous>, transform_indices = @transform_0, window_bounds = array<i64: 16, 128>}, {pipeline_mode = #tpu.pipeline_mode<synchronous>, transform_indices = @transform_1, window_bounds = array<i64: 16, 16>}, {pipeline_mode = #tpu.pipeline_mode<synchronous>, transform_indices = @transform_2, window_bounds = array<i64: 2176, 128>}, {pipeline_mode = #tpu.pipeline_mode<synchronous>, transform_indices = @transform_3, window_bounds = array<i64: 40, 128>}, {pipeline_mode = #tpu.pipeline_mode<synchronous>, transform_indices = @transform_4, window_bounds = array<i64: 16, 128>}]} {
    %c0 = arith.constant 0 : index
    %c0_0 = arith.constant 0 : index
    %0 = vector.load %arg1[%c0, %c0_0] : memref<16x128xf32, #tpu.memory_space<vmem>>, vector<16x128xf32>
    %c0_1 = arith.constant 0 : index
    %c0_2 = arith.constant 0 : index
    %1 = vector.load %arg2[%c0_1, %c0_2] : memref<16x16xf32, #tpu.memory_space<vmem>>, vector<16x16xf32>
    %c33 = arith.constant 33 : index
    %c0_3 = arith.constant 0 : index
    %2 = vector.load %arg4[%c33, %c0_3] : memref<40x128xf32, #tpu.memory_space<vmem>>, vector<1x128xf32>
    %c34 = arith.constant 34 : index
    %c0_4 = arith.constant 0 : index
    %3 = vector.load %arg4[%c34, %c0_4] : memref<40x128xf32, #tpu.memory_space<vmem>>, vector<1x128xf32>
    %c35 = arith.constant 35 : index
    %c0_5 = arith.constant 0 : index
    %4 = vector.load %arg4[%c35, %c0_5] : memref<40x128xf32, #tpu.memory_space<vmem>>, vector<1x128xf32>
    %c36 = arith.constant 36 : index
    %c0_6 = arith.constant 0 : index
    %5 = vector.load %arg4[%c36, %c0_6] : memref<40x128xf32, #tpu.memory_space<vmem>>, vector<1x128xf32>
    %6 = arith.truncf %0 : vector<16x128xf32> to vector<16x128xbf16>
    %c0_7 = arith.constant 0 : index
    %c0_8 = arith.constant 0 : index
    %7 = vector.load %arg3[%c0_7, %c0_8] : memref<2176x128xbf16, #tpu.memory_space<vmem>>, vector<128x128xbf16>
    %cst = arith.constant dense<0.000000e+00> : vector<16x128xf32>
    %8 = tpu.matmul %6, %7, %cst {dimension_numbers = #tpu.dot_dimension_numbers<[1], [0], [0], [1], [0, 0, 1, 1], [], []>} : vector<16x128xbf16>, vector<128x128xbf16>, vector<16x128xf32> -> vector<16x128xf32>
    %c0_9 = arith.constant 0 : index
    %c0_10 = arith.constant 0 : index
    %9 = vector.load %arg4[%c0_9, %c0_10] : memref<40x128xf32, #tpu.memory_space<vmem>>, vector<1x128xf32>
    %10 = vector.broadcast %9 : vector<1x128xf32> to vector<16x128xf32>
    %11 = arith.addf %8, %10 : vector<16x128xf32>
    %c128 = arith.constant 128 : index
    %c0_11 = arith.constant 0 : index
    %12 = vector.load %arg3[%c128, %c0_11] : memref<2176x128xbf16, #tpu.memory_space<vmem>>, vector<128x128xbf16>
    %cst_12 = arith.constant dense<0.000000e+00> : vector<16x128xf32>
    %13 = tpu.matmul %6, %12, %cst_12 {dimension_numbers = #tpu.dot_dimension_numbers<[1], [0], [0], [1], [0, 0, 1, 1], [], []>} : vector<16x128xbf16>, vector<128x128xbf16>, vector<16x128xf32> -> vector<16x128xf32>
    %c1 = arith.constant 1 : index
    %c0_13 = arith.constant 0 : index
    %14 = vector.load %arg4[%c1, %c0_13] : memref<40x128xf32, #tpu.memory_space<vmem>>, vector<1x128xf32>
    %15 = vector.broadcast %14 : vector<1x128xf32> to vector<16x128xf32>
    %16 = arith.addf %13, %15 : vector<16x128xf32>
    %c256 = arith.constant 256 : index
    %c0_14 = arith.constant 0 : index
    %17 = vector.load %arg3[%c256, %c0_14] : memref<2176x128xbf16, #tpu.memory_space<vmem>>, vector<128x128xbf16>
    %cst_15 = arith.constant dense<0.000000e+00> : vector<16x128xf32>
    %18 = tpu.matmul %6, %17, %cst_15 {dimension_numbers = #tpu.dot_dimension_numbers<[1], [0], [0], [1], [0, 0, 1, 1], [], []>} : vector<16x128xbf16>, vector<128x128xbf16>, vector<16x128xf32> -> vector<16x128xf32>
    %c2 = arith.constant 2 : index
    %c0_16 = arith.constant 0 : index
    %19 = vector.load %arg4[%c2, %c0_16] : memref<40x128xf32, #tpu.memory_space<vmem>>, vector<1x128xf32>
    %20 = vector.broadcast %19 : vector<1x128xf32> to vector<16x128xf32>
    %21 = arith.addf %18, %20 : vector<16x128xf32>
    %22 = arith.truncf %16 : vector<16x128xf32> to vector<16x128xbf16>
    %cst_17 = arith.constant 0.000000e+00 : f32
    %23 = vector.broadcast %cst_17 : f32 to vector<16x128xf32>
    %24 = vector.broadcast %2 : vector<1x128xf32> to vector<16x128xf32>
    %25 = arith.mulf %11, %24 : vector<16x128xf32>
    %26 = arith.truncf %25 : vector<16x128xf32> to vector<16x128xbf16>
    "tpu.trace_start"() <{level = 10 : i32, message = "qd,kd->qk"}> : () -> ()
    %cst_18 = arith.constant dense<0.000000e+00> : vector<16x16xf32>
    %27 = tpu.matmul %26, %22, %cst_18 {dimension_numbers = #tpu.dot_dimension_numbers<[1], [1], [0], [0], [0, 0, 1, 0], [], []>} : vector<16x128xbf16>, vector<16x128xbf16>, vector<16x16xf32> -> vector<16x16xf32>
    "tpu.trace_stop"() : () -> ()
    %28 = arith.addf %27, %1 : vector<16x16xf32>
    %cst_19 = arith.constant dense<0xFF800000> : vector<16xf32>
    %29 = vector.multi_reduction <maximumf>, %28, %cst_19 [1] : vector<16x16xf32> to vector<16xf32>
    %30 = vector.shape_cast %29 : vector<16xf32> to vector<16x1xf32>
    %31 = vector.broadcast %30 : vector<16x1xf32> to vector<16x16xf32>
    %32 = arith.subf %28, %31 : vector<16x16xf32>
    %33 = math.exp %32 : vector<16x16xf32>
    %cst_20 = arith.constant dense<0.000000e+00> : vector<16xf32>
    %34 = vector.multi_reduction <add>, %33, %cst_20 [1] : vector<16x16xf32> to vector<16xf32>
    %35 = vector.shape_cast %34 : vector<16xf32> to vector<16x1xf32>
    %36 = tpu.reciprocal %35 {approx = true} : vector<16x1xf32> -> vector<16x1xf32>
    %37 = vector.broadcast %36 : vector<16x1xf32> to vector<16x16xf32>
    %38 = arith.mulf %33, %37 : vector<16x16xf32>
    %39 = arith.truncf %38 : vector<16x16xf32> to vector<16x16xbf16>
    %40 = vector.broadcast %2 : vector<1x128xf32> to vector<16x128xf32>
    %41 = arith.mulf %21, %40 : vector<16x128xf32>
    %42 = arith.truncf %41 : vector<16x128xf32> to vector<16x128xbf16>
    %cst_21 = arith.constant dense<0.000000e+00> : vector<16x128xf32>
    %43 = tpu.matmul %39, %42, %cst_21 {dimension_numbers = #tpu.dot_dimension_numbers<[1], [0], [0], [1], [0, 0, 1, 1], [], []>} : vector<16x16xbf16>, vector<16x128xbf16>, vector<16x128xf32> -> vector<16x128xf32>
    %44 = arith.addf %23, %43 : vector<16x128xf32>
    %45 = vector.broadcast %3 : vector<1x128xf32> to vector<16x128xf32>
    %46 = arith.mulf %11, %45 : vector<16x128xf32>
    %47 = arith.truncf %46 : vector<16x128xf32> to vector<16x128xbf16>
    "tpu.trace_start"() <{level = 10 : i32, message = "qd,kd->qk"}> : () -> ()
    %cst_22 = arith.constant dense<0.000000e+00> : vector<16x16xf32>
    %48 = tpu.matmul %47, %22, %cst_22 {dimension_numbers = #tpu.dot_dimension_numbers<[1], [1], [0], [0], [0, 0, 1, 0], [], []>} : vector<16x128xbf16>, vector<16x128xbf16>, vector<16x16xf32> -> vector<16x16xf32>
    "tpu.trace_stop"() : () -> ()
    %49 = arith.addf %48, %1 : vector<16x16xf32>
    %cst_23 = arith.constant dense<0xFF800000> : vector<16xf32>
    %50 = vector.multi_reduction <maximumf>, %49, %cst_23 [1] : vector<16x16xf32> to vector<16xf32>
    %51 = vector.shape_cast %50 : vector<16xf32> to vector<16x1xf32>
    %52 = vector.broadcast %51 : vector<16x1xf32> to vector<16x16xf32>
    %53 = arith.subf %49, %52 : vector<16x16xf32>
    %54 = math.exp %53 : vector<16x16xf32>
    %cst_24 = arith.constant dense<0.000000e+00> : vector<16xf32>
    %55 = vector.multi_reduction <add>, %54, %cst_24 [1] : vector<16x16xf32> to vector<16xf32>
    %56 = vector.shape_cast %55 : vector<16xf32> to vector<16x1xf32>
    %57 = tpu.reciprocal %56 {approx = true} : vector<16x1xf32> -> vector<16x1xf32>
    %58 = vector.broadcast %57 : vector<16x1xf32> to vector<16x16xf32>
    %59 = arith.mulf %54, %58 : vector<16x16xf32>
    %60 = arith.truncf %59 : vector<16x16xf32> to vector<16x16xbf16>
    %61 = vector.broadcast %3 : vector<1x128xf32> to vector<16x128xf32>
    %62 = arith.mulf %21, %61 : vector<16x128xf32>
    %63 = arith.truncf %62 : vector<16x128xf32> to vector<16x128xbf16>
    %cst_25 = arith.constant dense<0.000000e+00> : vector<16x128xf32>
    %64 = tpu.matmul %60, %63, %cst_25 {dimension_numbers = #tpu.dot_dimension_numbers<[1], [0], [0], [1], [0, 0, 1, 1], [], []>} : vector<16x16xbf16>, vector<16x128xbf16>, vector<16x128xf32> -> vector<16x128xf32>
    %65 = arith.addf %44, %64 : vector<16x128xf32>
    %66 = vector.broadcast %4 : vector<1x128xf32> to vector<16x128xf32>
    %67 = arith.mulf %11, %66 : vector<16x128xf32>
    %68 = arith.truncf %67 : vector<16x128xf32> to vector<16x128xbf16>
    "tpu.trace_start"() <{level = 10 : i32, message = "qd,kd->qk"}> : () -> ()
    %cst_26 = arith.constant dense<0.000000e+00> : vector<16x16xf32>
    %69 = tpu.matmul %68, %22, %cst_26 {dimension_numbers = #tpu.dot_dimension_numbers<[1], [1], [0], [0], [0, 0, 1, 0], [], []>} : vector<16x128xbf16>, vector<16x128xbf16>, vector<16x16xf32> -> vector<16x16xf32>
    "tpu.trace_stop"() : () -> ()
    %70 = arith.addf %69, %1 : vector<16x16xf32>
    %cst_27 = arith.constant dense<0xFF800000> : vector<16xf32>
    %71 = vector.multi_reduction <maximumf>, %70, %cst_27 [1] : vector<16x16xf32> to vector<16xf32>
    %72 = vector.shape_cast %71 : vector<16xf32> to vector<16x1xf32>
    %73 = vector.broadcast %72 : vector<16x1xf32> to vector<16x16xf32>
    %74 = arith.subf %70, %73 : vector<16x16xf32>
    %75 = math.exp %74 : vector<16x16xf32>
    %cst_28 = arith.constant dense<0.000000e+00> : vector<16xf32>
    %76 = vector.multi_reduction <add>, %75, %cst_28 [1] : vector<16x16xf32> to vector<16xf32>
    %77 = vector.shape_cast %76 : vector<16xf32> to vector<16x1xf32>
    %78 = tpu.reciprocal %77 {approx = true} : vector<16x1xf32> -> vector<16x1xf32>
    %79 = vector.broadcast %78 : vector<16x1xf32> to vector<16x16xf32>
    %80 = arith.mulf %75, %79 : vector<16x16xf32>
    %81 = arith.truncf %80 : vector<16x16xf32> to vector<16x16xbf16>
    %82 = vector.broadcast %4 : vector<1x128xf32> to vector<16x128xf32>
    %83 = arith.mulf %21, %82 : vector<16x128xf32>
    %84 = arith.truncf %83 : vector<16x128xf32> to vector<16x128xbf16>
    %cst_29 = arith.constant dense<0.000000e+00> : vector<16x128xf32>
    %85 = tpu.matmul %81, %84, %cst_29 {dimension_numbers = #tpu.dot_dimension_numbers<[1], [0], [0], [1], [0, 0, 1, 1], [], []>} : vector<16x16xbf16>, vector<16x128xbf16>, vector<16x128xf32> -> vector<16x128xf32>
    %86 = arith.addf %65, %85 : vector<16x128xf32>
    %87 = vector.broadcast %5 : vector<1x128xf32> to vector<16x128xf32>
    %88 = arith.mulf %11, %87 : vector<16x128xf32>
    %89 = arith.truncf %88 : vector<16x128xf32> to vector<16x128xbf16>
    "tpu.trace_start"() <{level = 10 : i32, message = "qd,kd->qk"}> : () -> ()
    %cst_30 = arith.constant dense<0.000000e+00> : vector<16x16xf32>
    %90 = tpu.matmul %89, %22, %cst_30 {dimension_numbers = #tpu.dot_dimension_numbers<[1], [1], [0], [0], [0, 0, 1, 0], [], []>} : vector<16x128xbf16>, vector<16x128xbf16>, vector<16x16xf32> -> vector<16x16xf32>
    "tpu.trace_stop"() : () -> ()
    %91 = arith.addf %90, %1 : vector<16x16xf32>
    %cst_31 = arith.constant dense<0xFF800000> : vector<16xf32>
    %92 = vector.multi_reduction <maximumf>, %91, %cst_31 [1] : vector<16x16xf32> to vector<16xf32>
    %93 = vector.shape_cast %92 : vector<16xf32> to vector<16x1xf32>
    %94 = vector.broadcast %93 : vector<16x1xf32> to vector<16x16xf32>
    %95 = arith.subf %91, %94 : vector<16x16xf32>
    %96 = math.exp %95 : vector<16x16xf32>
    %cst_32 = arith.constant dense<0.000000e+00> : vector<16xf32>
    %97 = vector.multi_reduction <add>, %96, %cst_32 [1] : vector<16x16xf32> to vector<16xf32>
    %98 = vector.shape_cast %97 : vector<16xf32> to vector<16x1xf32>
    %99 = tpu.reciprocal %98 {approx = true} : vector<16x1xf32> -> vector<16x1xf32>
    %100 = vector.broadcast %99 : vector<16x1xf32> to vector<16x16xf32>
    %101 = arith.mulf %96, %100 : vector<16x16xf32>
    %102 = arith.truncf %101 : vector<16x16xf32> to vector<16x16xbf16>
    %103 = vector.broadcast %5 : vector<1x128xf32> to vector<16x128xf32>
    %104 = arith.mulf %21, %103 : vector<16x128xf32>
    %105 = arith.truncf %104 : vector<16x128xf32> to vector<16x128xbf16>
    %cst_33 = arith.constant dense<0.000000e+00> : vector<16x128xf32>
    %106 = tpu.matmul %102, %105, %cst_33 {dimension_numbers = #tpu.dot_dimension_numbers<[1], [0], [0], [1], [0, 0, 1, 1], [], []>} : vector<16x16xbf16>, vector<16x128xbf16>, vector<16x128xf32> -> vector<16x128xf32>
    %107 = arith.addf %86, %106 : vector<16x128xf32>
    %108 = arith.truncf %107 : vector<16x128xf32> to vector<16x128xbf16>
    %c384 = arith.constant 384 : index
    %c0_34 = arith.constant 0 : index
    %109 = vector.load %arg3[%c384, %c0_34] : memref<2176x128xbf16, #tpu.memory_space<vmem>>, vector<128x128xbf16>
    %cst_35 = arith.constant dense<0.000000e+00> : vector<16x128xf32>
    %110 = tpu.matmul %108, %109, %cst_35 {dimension_numbers = #tpu.dot_dimension_numbers<[1], [0], [0], [1], [0, 0, 1, 1], [], []>} : vector<16x128xbf16>, vector<128x128xbf16>, vector<16x128xf32> -> vector<16x128xf32>
    %c3 = arith.constant 3 : index
    %c0_36 = arith.constant 0 : index
    %111 = vector.load %arg4[%c3, %c0_36] : memref<40x128xf32, #tpu.memory_space<vmem>>, vector<1x128xf32>
    %112 = vector.broadcast %111 : vector<1x128xf32> to vector<16x128xf32>
    %113 = arith.addf %110, %112 : vector<16x128xf32>
    %114 = arith.addf %0, %113 : vector<16x128xf32>
    %c4 = arith.constant 4 : index
    %c0_37 = arith.constant 0 : index
    %115 = vector.load %arg4[%c4, %c0_37] : memref<40x128xf32, #tpu.memory_space<vmem>>, vector<1x128xf32>
    %c5 = arith.constant 5 : index
    %c0_38 = arith.constant 0 : index
    %116 = vector.load %arg4[%c5, %c0_38] : memref<40x128xf32, #tpu.memory_space<vmem>>, vector<1x128xf32>
    %cst_39 = arith.constant dense<0.000000e+00> : vector<16xf32>
    %117 = vector.multi_reduction <add>, %114, %cst_39 [1] : vector<16x128xf32> to vector<16xf32>
    %118 = vector.shape_cast %117 : vector<16xf32> to vector<16x1xf32>
    %cst_40 = arith.constant 1.562500e-02 : f32
    %119 = vector.broadcast %cst_40 : f32 to vector<16x1xf32>
    %120 = arith.mulf %118, %119 : vector<16x1xf32>
    %121 = arith.mulf %114, %114 : vector<16x128xf32>
    %cst_41 = arith.constant dense<0.000000e+00> : vector<16xf32>
    %122 = vector.multi_reduction <add>, %121, %cst_41 [1] : vector<16x128xf32> to vector<16xf32>
    %123 = vector.shape_cast %122 : vector<16xf32> to vector<16x1xf32>
    %cst_42 = arith.constant 1.562500e-02 : f32
    %124 = vector.broadcast %cst_42 : f32 to vector<16x1xf32>
    %125 = arith.mulf %123, %124 : vector<16x1xf32>
    %126 = arith.mulf %120, %120 : vector<16x1xf32>
    %127 = arith.subf %125, %126 : vector<16x1xf32>
    %cst_43 = arith.constant 0.000000e+00 : f32
    %128 = vector.broadcast %cst_43 : f32 to vector<16x1xf32>
    %129 = arith.maximumf %127, %128 : vector<16x1xf32>
    %130 = vector.broadcast %120 : vector<16x1xf32> to vector<16x128xf32>
    %131 = arith.subf %114, %130 : vector<16x128xf32>
    %cst_44 = arith.constant 9.99999974E-6 : f32
    %132 = vector.broadcast %cst_44 : f32 to vector<16x1xf32>
    %133 = arith.addf %129, %132 : vector<16x1xf32>
    %134 = math.rsqrt %133 : vector<16x1xf32>
    %135 = vector.broadcast %134 : vector<16x1xf32> to vector<16x128xf32>
    %136 = arith.mulf %131, %135 : vector<16x128xf32>
    %137 = vector.broadcast %115 : vector<1x128xf32> to vector<16x128xf32>
    %138 = arith.mulf %136, %137 : vector<16x128xf32>
    %139 = vector.broadcast %116 : vector<1x128xf32> to vector<16x128xf32>
    %140 = arith.addf %138, %139 : vector<16x128xf32>
    %c6 = arith.constant 6 : index
    %c0_45 = arith.constant 0 : index
    %141 = vector.load %arg4[%c6, %c0_45] : memref<40x128xf32, #tpu.memory_space<vmem>>, vector<1x128xf32>
    %142 = vector.broadcast %141 : vector<1x128xf32> to vector<16x128xf32>
    %143 = arith.addf %140, %142 : vector<16x128xf32>
    %c7 = arith.constant 7 : index
    %c0_46 = arith.constant 0 : index
    %144 = vector.load %arg4[%c7, %c0_46] : memref<40x128xf32, #tpu.memory_space<vmem>>, vector<1x128xf32>
    %c8 = arith.constant 8 : index
    %c0_47 = arith.constant 0 : index
    %145 = vector.load %arg4[%c8, %c0_47] : memref<40x128xf32, #tpu.memory_space<vmem>>, vector<1x128xf32>
    %cst_48 = arith.constant dense<0.000000e+00> : vector<16xf32>
    %146 = vector.multi_reduction <add>, %143, %cst_48 [1] : vector<16x128xf32> to vector<16xf32>
    %147 = vector.shape_cast %146 : vector<16xf32> to vector<16x1xf32>
    %cst_49 = arith.constant 1.562500e-02 : f32
    %148 = vector.broadcast %cst_49 : f32 to vector<16x1xf32>
    %149 = arith.mulf %147, %148 : vector<16x1xf32>
    %150 = arith.mulf %143, %143 : vector<16x128xf32>
    %cst_50 = arith.constant dense<0.000000e+00> : vector<16xf32>
    %151 = vector.multi_reduction <add>, %150, %cst_50 [1] : vector<16x128xf32> to vector<16xf32>
    %152 = vector.shape_cast %151 : vector<16xf32> to vector<16x1xf32>
    %cst_51 = arith.constant 1.562500e-02 : f32
    %153 = vector.broadcast %cst_51 : f32 to vector<16x1xf32>
    %154 = arith.mulf %152, %153 : vector<16x1xf32>
    %155 = arith.mulf %149, %149 : vector<16x1xf32>
    %156 = arith.subf %154, %155 : vector<16x1xf32>
    %cst_52 = arith.constant 0.000000e+00 : f32
    %157 = vector.broadcast %cst_52 : f32 to vector<16x1xf32>
    %158 = arith.maximumf %156, %157 : vector<16x1xf32>
    %159 = vector.broadcast %149 : vector<16x1xf32> to vector<16x128xf32>
    %160 = arith.subf %143, %159 : vector<16x128xf32>
    %cst_53 = arith.constant 9.99999974E-6 : f32
    %161 = vector.broadcast %cst_53 : f32 to vector<16x1xf32>
    %162 = arith.addf %158, %161 : vector<16x1xf32>
    %163 = math.rsqrt %162 : vector<16x1xf32>
    %164 = vector.broadcast %163 : vector<16x1xf32> to vector<16x128xf32>
    %165 = arith.mulf %160, %164 : vector<16x128xf32>
    %166 = vector.broadcast %144 : vector<1x128xf32> to vector<16x128xf32>
    %167 = arith.mulf %165, %166 : vector<16x128xf32>
    %168 = vector.broadcast %145 : vector<1x128xf32> to vector<16x128xf32>
    %169 = arith.addf %167, %168 : vector<16x128xf32>
    %170 = arith.truncf %169 : vector<16x128xf32> to vector<16x128xbf16>
    %c512 = arith.constant 512 : index
    %c0_54 = arith.constant 0 : index
    %171 = vector.load %arg3[%c512, %c0_54] : memref<2176x128xbf16, #tpu.memory_space<vmem>>, vector<128x128xbf16>
    %cst_55 = arith.constant dense<0.000000e+00> : vector<16x128xf32>
    %172 = tpu.matmul %170, %171, %cst_55 {dimension_numbers = #tpu.dot_dimension_numbers<[1], [0], [0], [1], [0, 0, 1, 1], [], []>} : vector<16x128xbf16>, vector<128x128xbf16>, vector<16x128xf32> -> vector<16x128xf32>
    %c9 = arith.constant 9 : index
    %c0_56 = arith.constant 0 : index
    %173 = vector.load %arg4[%c9, %c0_56] : memref<40x128xf32, #tpu.memory_space<vmem>>, vector<1x128xf32>
    %174 = vector.broadcast %173 : vector<1x128xf32> to vector<16x128xf32>
    %175 = arith.addf %172, %174 : vector<16x128xf32>
    %cst_57 = arith.constant 0.000000e+00 : f32
    %176 = vector.broadcast %cst_57 : f32 to vector<16x128xf32>
    %177 = arith.maximumf %175, %176 : vector<16x128xf32>
    %c640 = arith.constant 640 : index
    %c0_58 = arith.constant 0 : index
    %178 = vector.load %arg3[%c640, %c0_58] : memref<2176x128xbf16, #tpu.memory_space<vmem>>, vector<128x128xbf16>
    %cst_59 = arith.constant dense<0.000000e+00> : vector<16x128xf32>
    %179 = tpu.matmul %170, %178, %cst_59 {dimension_numbers = #tpu.dot_dimension_numbers<[1], [0], [0], [1], [0, 0, 1, 1], [], []>} : vector<16x128xbf16>, vector<128x128xbf16>, vector<16x128xf32> -> vector<16x128xf32>
    %c10 = arith.constant 10 : index
    %c0_60 = arith.constant 0 : index
    %180 = vector.load %arg4[%c10, %c0_60] : memref<40x128xf32, #tpu.memory_space<vmem>>, vector<1x128xf32>
    %181 = vector.broadcast %180 : vector<1x128xf32> to vector<16x128xf32>
    %182 = arith.addf %179, %181 : vector<16x128xf32>
    %cst_61 = arith.constant 0.000000e+00 : f32
    %183 = vector.broadcast %cst_61 : f32 to vector<16x128xf32>
    %184 = arith.maximumf %182, %183 : vector<16x128xf32>
    %185 = arith.truncf %177 : vector<16x128xf32> to vector<16x128xbf16>
    %c768 = arith.constant 768 : index
    %c0_62 = arith.constant 0 : index
    %186 = vector.load %arg3[%c768, %c0_62] : memref<2176x128xbf16, #tpu.memory_space<vmem>>, vector<128x128xbf16>
    %cst_63 = arith.constant dense<0.000000e+00> : vector<16x128xf32>
    %187 = tpu.matmul %185, %186, %cst_63 {dimension_numbers = #tpu.dot_dimension_numbers<[1], [0], [0], [1], [0, 0, 1, 1], [], []>} : vector<16x128xbf16>, vector<128x128xbf16>, vector<16x128xf32> -> vector<16x128xf32>
    %188 = arith.truncf %184 : vector<16x128xf32> to vector<16x128xbf16>
    %c896 = arith.constant 896 : index
    %c0_64 = arith.constant 0 : index
    %189 = vector.load %arg3[%c896, %c0_64] : memref<2176x128xbf16, #tpu.memory_space<vmem>>, vector<128x128xbf16>
    %cst_65 = arith.constant dense<0.000000e+00> : vector<16x128xf32>
    %190 = tpu.matmul %188, %189, %cst_65 {dimension_numbers = #tpu.dot_dimension_numbers<[1], [0], [0], [1], [0, 0, 1, 1], [], []>} : vector<16x128xbf16>, vector<128x128xbf16>, vector<16x128xf32> -> vector<16x128xf32>
    %191 = arith.addf %187, %190 : vector<16x128xf32>
    %c11 = arith.constant 11 : index
    %c0_66 = arith.constant 0 : index
    %192 = vector.load %arg4[%c11, %c0_66] : memref<40x128xf32, #tpu.memory_space<vmem>>, vector<1x128xf32>
    %193 = vector.broadcast %192 : vector<1x128xf32> to vector<16x128xf32>
    %194 = arith.addf %191, %193 : vector<16x128xf32>
    %195 = arith.addf %169, %194 : vector<16x128xf32>
    %c12 = arith.constant 12 : index
    %c0_67 = arith.constant 0 : index
    %196 = vector.load %arg4[%c12, %c0_67] : memref<40x128xf32, #tpu.memory_space<vmem>>, vector<1x128xf32>
    %c13 = arith.constant 13 : index
    %c0_68 = arith.constant 0 : index
    %197 = vector.load %arg4[%c13, %c0_68] : memref<40x128xf32, #tpu.memory_space<vmem>>, vector<1x128xf32>
    %cst_69 = arith.constant dense<0.000000e+00> : vector<16xf32>
    %198 = vector.multi_reduction <add>, %195, %cst_69 [1] : vector<16x128xf32> to vector<16xf32>
    %199 = vector.shape_cast %198 : vector<16xf32> to vector<16x1xf32>
    %cst_70 = arith.constant 1.562500e-02 : f32
    %200 = vector.broadcast %cst_70 : f32 to vector<16x1xf32>
    %201 = arith.mulf %199, %200 : vector<16x1xf32>
    %202 = arith.mulf %195, %195 : vector<16x128xf32>
    %cst_71 = arith.constant dense<0.000000e+00> : vector<16xf32>
    %203 = vector.multi_reduction <add>, %202, %cst_71 [1] : vector<16x128xf32> to vector<16xf32>
    %204 = vector.shape_cast %203 : vector<16xf32> to vector<16x1xf32>
    %cst_72 = arith.constant 1.562500e-02 : f32
    %205 = vector.broadcast %cst_72 : f32 to vector<16x1xf32>
    %206 = arith.mulf %204, %205 : vector<16x1xf32>
    %207 = arith.mulf %201, %201 : vector<16x1xf32>
    %208 = arith.subf %206, %207 : vector<16x1xf32>
    %cst_73 = arith.constant 0.000000e+00 : f32
    %209 = vector.broadcast %cst_73 : f32 to vector<16x1xf32>
    %210 = arith.maximumf %208, %209 : vector<16x1xf32>
    %211 = vector.broadcast %201 : vector<16x1xf32> to vector<16x128xf32>
    %212 = arith.subf %195, %211 : vector<16x128xf32>
    %cst_74 = arith.constant 9.99999974E-6 : f32
    %213 = vector.broadcast %cst_74 : f32 to vector<16x1xf32>
    %214 = arith.addf %210, %213 : vector<16x1xf32>
    %215 = math.rsqrt %214 : vector<16x1xf32>
    %216 = vector.broadcast %215 : vector<16x1xf32> to vector<16x128xf32>
    %217 = arith.mulf %212, %216 : vector<16x128xf32>
    %218 = vector.broadcast %196 : vector<1x128xf32> to vector<16x128xf32>
    %219 = arith.mulf %217, %218 : vector<16x128xf32>
    %220 = vector.broadcast %197 : vector<1x128xf32> to vector<16x128xf32>
    %221 = arith.addf %219, %220 : vector<16x128xf32>
    %222 = arith.truncf %221 : vector<16x128xf32> to vector<16x128xbf16>
    %c1024 = arith.constant 1024 : index
    %c0_75 = arith.constant 0 : index
    %223 = vector.load %arg3[%c1024, %c0_75] : memref<2176x128xbf16, #tpu.memory_space<vmem>>, vector<128x128xbf16>
    %cst_76 = arith.constant dense<0.000000e+00> : vector<16x128xf32>
    %224 = tpu.matmul %222, %223, %cst_76 {dimension_numbers = #tpu.dot_dimension_numbers<[1], [0], [0], [1], [0, 0, 1, 1], [], []>} : vector<16x128xbf16>, vector<128x128xbf16>, vector<16x128xf32> -> vector<16x128xf32>
    %c16 = arith.constant 16 : index
    %c0_77 = arith.constant 0 : index
    %225 = vector.load %arg4[%c16, %c0_77] : memref<40x128xf32, #tpu.memory_space<vmem>>, vector<1x128xf32>
    %226 = vector.broadcast %225 : vector<1x128xf32> to vector<16x128xf32>
    %227 = arith.addf %224, %226 : vector<16x128xf32>
    %c1152 = arith.constant 1152 : index
    %c0_78 = arith.constant 0 : index
    %228 = vector.load %arg3[%c1152, %c0_78] : memref<2176x128xbf16, #tpu.memory_space<vmem>>, vector<128x128xbf16>
    %cst_79 = arith.constant dense<0.000000e+00> : vector<16x128xf32>
    %229 = tpu.matmul %222, %228, %cst_79 {dimension_numbers = #tpu.dot_dimension_numbers<[1], [0], [0], [1], [0, 0, 1, 1], [], []>} : vector<16x128xbf16>, vector<128x128xbf16>, vector<16x128xf32> -> vector<16x128xf32>
    %c17 = arith.constant 17 : index
    %c0_80 = arith.constant 0 : index
    %230 = vector.load %arg4[%c17, %c0_80] : memref<40x128xf32, #tpu.memory_space<vmem>>, vector<1x128xf32>
    %231 = vector.broadcast %230 : vector<1x128xf32> to vector<16x128xf32>
    %232 = arith.addf %229, %231 : vector<16x128xf32>
    %c1280 = arith.constant 1280 : index
    %c0_81 = arith.constant 0 : index
    %233 = vector.load %arg3[%c1280, %c0_81] : memref<2176x128xbf16, #tpu.memory_space<vmem>>, vector<128x128xbf16>
    %cst_82 = arith.constant dense<0.000000e+00> : vector<16x128xf32>
    %234 = tpu.matmul %222, %233, %cst_82 {dimension_numbers = #tpu.dot_dimension_numbers<[1], [0], [0], [1], [0, 0, 1, 1], [], []>} : vector<16x128xbf16>, vector<128x128xbf16>, vector<16x128xf32> -> vector<16x128xf32>
    %c18 = arith.constant 18 : index
    %c0_83 = arith.constant 0 : index
    %235 = vector.load %arg4[%c18, %c0_83] : memref<40x128xf32, #tpu.memory_space<vmem>>, vector<1x128xf32>
    %236 = vector.broadcast %235 : vector<1x128xf32> to vector<16x128xf32>
    %237 = arith.addf %234, %236 : vector<16x128xf32>
    %238 = arith.truncf %232 : vector<16x128xf32> to vector<16x128xbf16>
    %cst_84 = arith.constant 0.000000e+00 : f32
    %239 = vector.broadcast %cst_84 : f32 to vector<16x128xf32>
    %240 = vector.broadcast %2 : vector<1x128xf32> to vector<16x128xf32>
    %241 = arith.mulf %227, %240 : vector<16x128xf32>
    %242 = arith.truncf %241 : vector<16x128xf32> to vector<16x128xbf16>
    "tpu.trace_start"() <{level = 10 : i32, message = "qd,kd->qk"}> : () -> ()
    %cst_85 = arith.constant dense<0.000000e+00> : vector<16x16xf32>
    %243 = tpu.matmul %242, %238, %cst_85 {dimension_numbers = #tpu.dot_dimension_numbers<[1], [1], [0], [0], [0, 0, 1, 0], [], []>} : vector<16x128xbf16>, vector<16x128xbf16>, vector<16x16xf32> -> vector<16x16xf32>
    "tpu.trace_stop"() : () -> ()
    %244 = arith.addf %243, %1 : vector<16x16xf32>
    %cst_86 = arith.constant dense<0xFF800000> : vector<16xf32>
    %245 = vector.multi_reduction <maximumf>, %244, %cst_86 [1] : vector<16x16xf32> to vector<16xf32>
    %246 = vector.shape_cast %245 : vector<16xf32> to vector<16x1xf32>
    %247 = vector.broadcast %246 : vector<16x1xf32> to vector<16x16xf32>
    %248 = arith.subf %244, %247 : vector<16x16xf32>
    %249 = math.exp %248 : vector<16x16xf32>
    %cst_87 = arith.constant dense<0.000000e+00> : vector<16xf32>
    %250 = vector.multi_reduction <add>, %249, %cst_87 [1] : vector<16x16xf32> to vector<16xf32>
    %251 = vector.shape_cast %250 : vector<16xf32> to vector<16x1xf32>
    %252 = tpu.reciprocal %251 {approx = true} : vector<16x1xf32> -> vector<16x1xf32>
    %253 = vector.broadcast %252 : vector<16x1xf32> to vector<16x16xf32>
    %254 = arith.mulf %249, %253 : vector<16x16xf32>
    %255 = arith.truncf %254 : vector<16x16xf32> to vector<16x16xbf16>
    %256 = vector.broadcast %2 : vector<1x128xf32> to vector<16x128xf32>
    %257 = arith.mulf %237, %256 : vector<16x128xf32>
    %258 = arith.truncf %257 : vector<16x128xf32> to vector<16x128xbf16>
    %cst_88 = arith.constant dense<0.000000e+00> : vector<16x128xf32>
    %259 = tpu.matmul %255, %258, %cst_88 {dimension_numbers = #tpu.dot_dimension_numbers<[1], [0], [0], [1], [0, 0, 1, 1], [], []>} : vector<16x16xbf16>, vector<16x128xbf16>, vector<16x128xf32> -> vector<16x128xf32>
    %260 = arith.addf %239, %259 : vector<16x128xf32>
    %261 = vector.broadcast %3 : vector<1x128xf32> to vector<16x128xf32>
    %262 = arith.mulf %227, %261 : vector<16x128xf32>
    %263 = arith.truncf %262 : vector<16x128xf32> to vector<16x128xbf16>
    "tpu.trace_start"() <{level = 10 : i32, message = "qd,kd->qk"}> : () -> ()
    %cst_89 = arith.constant dense<0.000000e+00> : vector<16x16xf32>
    %264 = tpu.matmul %263, %238, %cst_89 {dimension_numbers = #tpu.dot_dimension_numbers<[1], [1], [0], [0], [0, 0, 1, 0], [], []>} : vector<16x128xbf16>, vector<16x128xbf16>, vector<16x16xf32> -> vector<16x16xf32>
    "tpu.trace_stop"() : () -> ()
    %265 = arith.addf %264, %1 : vector<16x16xf32>
    %cst_90 = arith.constant dense<0xFF800000> : vector<16xf32>
    %266 = vector.multi_reduction <maximumf>, %265, %cst_90 [1] : vector<16x16xf32> to vector<16xf32>
    %267 = vector.shape_cast %266 : vector<16xf32> to vector<16x1xf32>
    %268 = vector.broadcast %267 : vector<16x1xf32> to vector<16x16xf32>
    %269 = arith.subf %265, %268 : vector<16x16xf32>
    %270 = math.exp %269 : vector<16x16xf32>
    %cst_91 = arith.constant dense<0.000000e+00> : vector<16xf32>
    %271 = vector.multi_reduction <add>, %270, %cst_91 [1] : vector<16x16xf32> to vector<16xf32>
    %272 = vector.shape_cast %271 : vector<16xf32> to vector<16x1xf32>
    %273 = tpu.reciprocal %272 {approx = true} : vector<16x1xf32> -> vector<16x1xf32>
    %274 = vector.broadcast %273 : vector<16x1xf32> to vector<16x16xf32>
    %275 = arith.mulf %270, %274 : vector<16x16xf32>
    %276 = arith.truncf %275 : vector<16x16xf32> to vector<16x16xbf16>
    %277 = vector.broadcast %3 : vector<1x128xf32> to vector<16x128xf32>
    %278 = arith.mulf %237, %277 : vector<16x128xf32>
    %279 = arith.truncf %278 : vector<16x128xf32> to vector<16x128xbf16>
    %cst_92 = arith.constant dense<0.000000e+00> : vector<16x128xf32>
    %280 = tpu.matmul %276, %279, %cst_92 {dimension_numbers = #tpu.dot_dimension_numbers<[1], [0], [0], [1], [0, 0, 1, 1], [], []>} : vector<16x16xbf16>, vector<16x128xbf16>, vector<16x128xf32> -> vector<16x128xf32>
    %281 = arith.addf %260, %280 : vector<16x128xf32>
    %282 = vector.broadcast %4 : vector<1x128xf32> to vector<16x128xf32>
    %283 = arith.mulf %227, %282 : vector<16x128xf32>
    %284 = arith.truncf %283 : vector<16x128xf32> to vector<16x128xbf16>
    "tpu.trace_start"() <{level = 10 : i32, message = "qd,kd->qk"}> : () -> ()
    %cst_93 = arith.constant dense<0.000000e+00> : vector<16x16xf32>
    %285 = tpu.matmul %284, %238, %cst_93 {dimension_numbers = #tpu.dot_dimension_numbers<[1], [1], [0], [0], [0, 0, 1, 0], [], []>} : vector<16x128xbf16>, vector<16x128xbf16>, vector<16x16xf32> -> vector<16x16xf32>
    "tpu.trace_stop"() : () -> ()
    %286 = arith.addf %285, %1 : vector<16x16xf32>
    %cst_94 = arith.constant dense<0xFF800000> : vector<16xf32>
    %287 = vector.multi_reduction <maximumf>, %286, %cst_94 [1] : vector<16x16xf32> to vector<16xf32>
    %288 = vector.shape_cast %287 : vector<16xf32> to vector<16x1xf32>
    %289 = vector.broadcast %288 : vector<16x1xf32> to vector<16x16xf32>
    %290 = arith.subf %286, %289 : vector<16x16xf32>
    %291 = math.exp %290 : vector<16x16xf32>
    %cst_95 = arith.constant dense<0.000000e+00> : vector<16xf32>
    %292 = vector.multi_reduction <add>, %291, %cst_95 [1] : vector<16x16xf32> to vector<16xf32>
    %293 = vector.shape_cast %292 : vector<16xf32> to vector<16x1xf32>
    %294 = tpu.reciprocal %293 {approx = true} : vector<16x1xf32> -> vector<16x1xf32>
    %295 = vector.broadcast %294 : vector<16x1xf32> to vector<16x16xf32>
    %296 = arith.mulf %291, %295 : vector<16x16xf32>
    %297 = arith.truncf %296 : vector<16x16xf32> to vector<16x16xbf16>
    %298 = vector.broadcast %4 : vector<1x128xf32> to vector<16x128xf32>
    %299 = arith.mulf %237, %298 : vector<16x128xf32>
    %300 = arith.truncf %299 : vector<16x128xf32> to vector<16x128xbf16>
    %cst_96 = arith.constant dense<0.000000e+00> : vector<16x128xf32>
    %301 = tpu.matmul %297, %300, %cst_96 {dimension_numbers = #tpu.dot_dimension_numbers<[1], [0], [0], [1], [0, 0, 1, 1], [], []>} : vector<16x16xbf16>, vector<16x128xbf16>, vector<16x128xf32> -> vector<16x128xf32>
    %302 = arith.addf %281, %301 : vector<16x128xf32>
    %303 = vector.broadcast %5 : vector<1x128xf32> to vector<16x128xf32>
    %304 = arith.mulf %227, %303 : vector<16x128xf32>
    %305 = arith.truncf %304 : vector<16x128xf32> to vector<16x128xbf16>
    "tpu.trace_start"() <{level = 10 : i32, message = "qd,kd->qk"}> : () -> ()
    %cst_97 = arith.constant dense<0.000000e+00> : vector<16x16xf32>
    %306 = tpu.matmul %305, %238, %cst_97 {dimension_numbers = #tpu.dot_dimension_numbers<[1], [1], [0], [0], [0, 0, 1, 0], [], []>} : vector<16x128xbf16>, vector<16x128xbf16>, vector<16x16xf32> -> vector<16x16xf32>
    "tpu.trace_stop"() : () -> ()
    %307 = arith.addf %306, %1 : vector<16x16xf32>
    %cst_98 = arith.constant dense<0xFF800000> : vector<16xf32>
    %308 = vector.multi_reduction <maximumf>, %307, %cst_98 [1] : vector<16x16xf32> to vector<16xf32>
    %309 = vector.shape_cast %308 : vector<16xf32> to vector<16x1xf32>
    %310 = vector.broadcast %309 : vector<16x1xf32> to vector<16x16xf32>
    %311 = arith.subf %307, %310 : vector<16x16xf32>
    %312 = math.exp %311 : vector<16x16xf32>
    %cst_99 = arith.constant dense<0.000000e+00> : vector<16xf32>
    %313 = vector.multi_reduction <add>, %312, %cst_99 [1] : vector<16x16xf32> to vector<16xf32>
    %314 = vector.shape_cast %313 : vector<16xf32> to vector<16x1xf32>
    %315 = tpu.reciprocal %314 {approx = true} : vector<16x1xf32> -> vector<16x1xf32>
    %316 = vector.broadcast %315 : vector<16x1xf32> to vector<16x16xf32>
    %317 = arith.mulf %312, %316 : vector<16x16xf32>
    %318 = arith.truncf %317 : vector<16x16xf32> to vector<16x16xbf16>
    %319 = vector.broadcast %5 : vector<1x128xf32> to vector<16x128xf32>
    %320 = arith.mulf %237, %319 : vector<16x128xf32>
    %321 = arith.truncf %320 : vector<16x128xf32> to vector<16x128xbf16>
    %cst_100 = arith.constant dense<0.000000e+00> : vector<16x128xf32>
    %322 = tpu.matmul %318, %321, %cst_100 {dimension_numbers = #tpu.dot_dimension_numbers<[1], [0], [0], [1], [0, 0, 1, 1], [], []>} : vector<16x16xbf16>, vector<16x128xbf16>, vector<16x128xf32> -> vector<16x128xf32>
    %323 = arith.addf %302, %322 : vector<16x128xf32>
    %324 = arith.truncf %323 : vector<16x128xf32> to vector<16x128xbf16>
    %c1408 = arith.constant 1408 : index
    %c0_101 = arith.constant 0 : index
    %325 = vector.load %arg3[%c1408, %c0_101] : memref<2176x128xbf16, #tpu.memory_space<vmem>>, vector<128x128xbf16>
    %cst_102 = arith.constant dense<0.000000e+00> : vector<16x128xf32>
    %326 = tpu.matmul %324, %325, %cst_102 {dimension_numbers = #tpu.dot_dimension_numbers<[1], [0], [0], [1], [0, 0, 1, 1], [], []>} : vector<16x128xbf16>, vector<128x128xbf16>, vector<16x128xf32> -> vector<16x128xf32>
    %c19 = arith.constant 19 : index
    %c0_103 = arith.constant 0 : index
    %327 = vector.load %arg4[%c19, %c0_103] : memref<40x128xf32, #tpu.memory_space<vmem>>, vector<1x128xf32>
    %328 = vector.broadcast %327 : vector<1x128xf32> to vector<16x128xf32>
    %329 = arith.addf %326, %328 : vector<16x128xf32>
    %330 = arith.addf %221, %329 : vector<16x128xf32>
    %c20 = arith.constant 20 : index
    %c0_104 = arith.constant 0 : index
    %331 = vector.load %arg4[%c20, %c0_104] : memref<40x128xf32, #tpu.memory_space<vmem>>, vector<1x128xf32>
    %c21 = arith.constant 21 : index
    %c0_105 = arith.constant 0 : index
    %332 = vector.load %arg4[%c21, %c0_105] : memref<40x128xf32, #tpu.memory_space<vmem>>, vector<1x128xf32>
    %cst_106 = arith.constant dense<0.000000e+00> : vector<16xf32>
    %333 = vector.multi_reduction <add>, %330, %cst_106 [1] : vector<16x128xf32> to vector<16xf32>
    %334 = vector.shape_cast %333 : vector<16xf32> to vector<16x1xf32>
    %cst_107 = arith.constant 1.562500e-02 : f32
    %335 = vector.broadcast %cst_107 : f32 to vector<16x1xf32>
    %336 = arith.mulf %334, %335 : vector<16x1xf32>
    %337 = arith.mulf %330, %330 : vector<16x128xf32>
    %cst_108 = arith.constant dense<0.000000e+00> : vector<16xf32>
    %338 = vector.multi_reduction <add>, %337, %cst_108 [1] : vector<16x128xf32> to vector<16xf32>
    %339 = vector.shape_cast %338 : vector<16xf32> to vector<16x1xf32>
    %cst_109 = arith.constant 1.562500e-02 : f32
    %340 = vector.broadcast %cst_109 : f32 to vector<16x1xf32>
    %341 = arith.mulf %339, %340 : vector<16x1xf32>
    %342 = arith.mulf %336, %336 : vector<16x1xf32>
    %343 = arith.subf %341, %342 : vector<16x1xf32>
    %cst_110 = arith.constant 0.000000e+00 : f32
    %344 = vector.broadcast %cst_110 : f32 to vector<16x1xf32>
    %345 = arith.maximumf %343, %344 : vector<16x1xf32>
    %346 = vector.broadcast %336 : vector<16x1xf32> to vector<16x128xf32>
    %347 = arith.subf %330, %346 : vector<16x128xf32>
    %cst_111 = arith.constant 9.99999974E-6 : f32
    %348 = vector.broadcast %cst_111 : f32 to vector<16x1xf32>
    %349 = arith.addf %345, %348 : vector<16x1xf32>
    %350 = math.rsqrt %349 : vector<16x1xf32>
    %351 = vector.broadcast %350 : vector<16x1xf32> to vector<16x128xf32>
    %352 = arith.mulf %347, %351 : vector<16x128xf32>
    %353 = vector.broadcast %331 : vector<1x128xf32> to vector<16x128xf32>
    %354 = arith.mulf %352, %353 : vector<16x128xf32>
    %355 = vector.broadcast %332 : vector<1x128xf32> to vector<16x128xf32>
    %356 = arith.addf %354, %355 : vector<16x128xf32>
    %c22 = arith.constant 22 : index
    %c0_112 = arith.constant 0 : index
    %357 = vector.load %arg4[%c22, %c0_112] : memref<40x128xf32, #tpu.memory_space<vmem>>, vector<1x128xf32>
    %358 = vector.broadcast %357 : vector<1x128xf32> to vector<16x128xf32>
    %359 = arith.addf %356, %358 : vector<16x128xf32>
    %c23 = arith.constant 23 : index
    %c0_113 = arith.constant 0 : index
    %360 = vector.load %arg4[%c23, %c0_113] : memref<40x128xf32, #tpu.memory_space<vmem>>, vector<1x128xf32>
    %c24 = arith.constant 24 : index
    %c0_114 = arith.constant 0 : index
    %361 = vector.load %arg4[%c24, %c0_114] : memref<40x128xf32, #tpu.memory_space<vmem>>, vector<1x128xf32>
    %cst_115 = arith.constant dense<0.000000e+00> : vector<16xf32>
    %362 = vector.multi_reduction <add>, %359, %cst_115 [1] : vector<16x128xf32> to vector<16xf32>
    %363 = vector.shape_cast %362 : vector<16xf32> to vector<16x1xf32>
    %cst_116 = arith.constant 1.562500e-02 : f32
    %364 = vector.broadcast %cst_116 : f32 to vector<16x1xf32>
    %365 = arith.mulf %363, %364 : vector<16x1xf32>
    %366 = arith.mulf %359, %359 : vector<16x128xf32>
    %cst_117 = arith.constant dense<0.000000e+00> : vector<16xf32>
    %367 = vector.multi_reduction <add>, %366, %cst_117 [1] : vector<16x128xf32> to vector<16xf32>
    %368 = vector.shape_cast %367 : vector<16xf32> to vector<16x1xf32>
    %cst_118 = arith.constant 1.562500e-02 : f32
    %369 = vector.broadcast %cst_118 : f32 to vector<16x1xf32>
    %370 = arith.mulf %368, %369 : vector<16x1xf32>
    %371 = arith.mulf %365, %365 : vector<16x1xf32>
    %372 = arith.subf %370, %371 : vector<16x1xf32>
    %cst_119 = arith.constant 0.000000e+00 : f32
    %373 = vector.broadcast %cst_119 : f32 to vector<16x1xf32>
    %374 = arith.maximumf %372, %373 : vector<16x1xf32>
    %375 = vector.broadcast %365 : vector<16x1xf32> to vector<16x128xf32>
    %376 = arith.subf %359, %375 : vector<16x128xf32>
    %cst_120 = arith.constant 9.99999974E-6 : f32
    %377 = vector.broadcast %cst_120 : f32 to vector<16x1xf32>
    %378 = arith.addf %374, %377 : vector<16x1xf32>
    %379 = math.rsqrt %378 : vector<16x1xf32>
    %380 = vector.broadcast %379 : vector<16x1xf32> to vector<16x128xf32>
    %381 = arith.mulf %376, %380 : vector<16x128xf32>
    %382 = vector.broadcast %360 : vector<1x128xf32> to vector<16x128xf32>
    %383 = arith.mulf %381, %382 : vector<16x128xf32>
    %384 = vector.broadcast %361 : vector<1x128xf32> to vector<16x128xf32>
    %385 = arith.addf %383, %384 : vector<16x128xf32>
    %386 = arith.truncf %385 : vector<16x128xf32> to vector<16x128xbf16>
    %c1536 = arith.constant 1536 : index
    %c0_121 = arith.constant 0 : index
    %387 = vector.load %arg3[%c1536, %c0_121] : memref<2176x128xbf16, #tpu.memory_space<vmem>>, vector<128x128xbf16>
    %cst_122 = arith.constant dense<0.000000e+00> : vector<16x128xf32>
    %388 = tpu.matmul %386, %387, %cst_122 {dimension_numbers = #tpu.dot_dimension_numbers<[1], [0], [0], [1], [0, 0, 1, 1], [], []>} : vector<16x128xbf16>, vector<128x128xbf16>, vector<16x128xf32> -> vector<16x128xf32>
    %c25 = arith.constant 25 : index
    %c0_123 = arith.constant 0 : index
    %389 = vector.load %arg4[%c25, %c0_123] : memref<40x128xf32, #tpu.memory_space<vmem>>, vector<1x128xf32>
    %390 = vector.broadcast %389 : vector<1x128xf32> to vector<16x128xf32>
    %391 = arith.addf %388, %390 : vector<16x128xf32>
    %cst_124 = arith.constant 0.000000e+00 : f32
    %392 = vector.broadcast %cst_124 : f32 to vector<16x128xf32>
    %393 = arith.maximumf %391, %392 : vector<16x128xf32>
    %c1664 = arith.constant 1664 : index
    %c0_125 = arith.constant 0 : index
    %394 = vector.load %arg3[%c1664, %c0_125] : memref<2176x128xbf16, #tpu.memory_space<vmem>>, vector<128x128xbf16>
    %cst_126 = arith.constant dense<0.000000e+00> : vector<16x128xf32>
    %395 = tpu.matmul %386, %394, %cst_126 {dimension_numbers = #tpu.dot_dimension_numbers<[1], [0], [0], [1], [0, 0, 1, 1], [], []>} : vector<16x128xbf16>, vector<128x128xbf16>, vector<16x128xf32> -> vector<16x128xf32>
    %c26 = arith.constant 26 : index
    %c0_127 = arith.constant 0 : index
    %396 = vector.load %arg4[%c26, %c0_127] : memref<40x128xf32, #tpu.memory_space<vmem>>, vector<1x128xf32>
    %397 = vector.broadcast %396 : vector<1x128xf32> to vector<16x128xf32>
    %398 = arith.addf %395, %397 : vector<16x128xf32>
    %cst_128 = arith.constant 0.000000e+00 : f32
    %399 = vector.broadcast %cst_128 : f32 to vector<16x128xf32>
    %400 = arith.maximumf %398, %399 : vector<16x128xf32>
    %401 = arith.truncf %393 : vector<16x128xf32> to vector<16x128xbf16>
    %c1792 = arith.constant 1792 : index
    %c0_129 = arith.constant 0 : index
    %402 = vector.load %arg3[%c1792, %c0_129] : memref<2176x128xbf16, #tpu.memory_space<vmem>>, vector<128x128xbf16>
    %cst_130 = arith.constant dense<0.000000e+00> : vector<16x128xf32>
    %403 = tpu.matmul %401, %402, %cst_130 {dimension_numbers = #tpu.dot_dimension_numbers<[1], [0], [0], [1], [0, 0, 1, 1], [], []>} : vector<16x128xbf16>, vector<128x128xbf16>, vector<16x128xf32> -> vector<16x128xf32>
    %404 = arith.truncf %400 : vector<16x128xf32> to vector<16x128xbf16>
    %c1920 = arith.constant 1920 : index
    %c0_131 = arith.constant 0 : index
    %405 = vector.load %arg3[%c1920, %c0_131] : memref<2176x128xbf16, #tpu.memory_space<vmem>>, vector<128x128xbf16>
    %cst_132 = arith.constant dense<0.000000e+00> : vector<16x128xf32>
    %406 = tpu.matmul %404, %405, %cst_132 {dimension_numbers = #tpu.dot_dimension_numbers<[1], [0], [0], [1], [0, 0, 1, 1], [], []>} : vector<16x128xbf16>, vector<128x128xbf16>, vector<16x128xf32> -> vector<16x128xf32>
    %407 = arith.addf %403, %406 : vector<16x128xf32>
    %c27 = arith.constant 27 : index
    %c0_133 = arith.constant 0 : index
    %408 = vector.load %arg4[%c27, %c0_133] : memref<40x128xf32, #tpu.memory_space<vmem>>, vector<1x128xf32>
    %409 = vector.broadcast %408 : vector<1x128xf32> to vector<16x128xf32>
    %410 = arith.addf %407, %409 : vector<16x128xf32>
    %411 = arith.addf %385, %410 : vector<16x128xf32>
    %c28 = arith.constant 28 : index
    %c0_134 = arith.constant 0 : index
    %412 = vector.load %arg4[%c28, %c0_134] : memref<40x128xf32, #tpu.memory_space<vmem>>, vector<1x128xf32>
    %c29 = arith.constant 29 : index
    %c0_135 = arith.constant 0 : index
    %413 = vector.load %arg4[%c29, %c0_135] : memref<40x128xf32, #tpu.memory_space<vmem>>, vector<1x128xf32>
    %cst_136 = arith.constant dense<0.000000e+00> : vector<16xf32>
    %414 = vector.multi_reduction <add>, %411, %cst_136 [1] : vector<16x128xf32> to vector<16xf32>
    %415 = vector.shape_cast %414 : vector<16xf32> to vector<16x1xf32>
    %cst_137 = arith.constant 1.562500e-02 : f32
    %416 = vector.broadcast %cst_137 : f32 to vector<16x1xf32>
    %417 = arith.mulf %415, %416 : vector<16x1xf32>
    %418 = arith.mulf %411, %411 : vector<16x128xf32>
    %cst_138 = arith.constant dense<0.000000e+00> : vector<16xf32>
    %419 = vector.multi_reduction <add>, %418, %cst_138 [1] : vector<16x128xf32> to vector<16xf32>
    %420 = vector.shape_cast %419 : vector<16xf32> to vector<16x1xf32>
    %cst_139 = arith.constant 1.562500e-02 : f32
    %421 = vector.broadcast %cst_139 : f32 to vector<16x1xf32>
    %422 = arith.mulf %420, %421 : vector<16x1xf32>
    %423 = arith.mulf %417, %417 : vector<16x1xf32>
    %424 = arith.subf %422, %423 : vector<16x1xf32>
    %cst_140 = arith.constant 0.000000e+00 : f32
    %425 = vector.broadcast %cst_140 : f32 to vector<16x1xf32>
    %426 = arith.maximumf %424, %425 : vector<16x1xf32>
    %427 = vector.broadcast %417 : vector<16x1xf32> to vector<16x128xf32>
    %428 = arith.subf %411, %427 : vector<16x128xf32>
    %cst_141 = arith.constant 9.99999974E-6 : f32
    %429 = vector.broadcast %cst_141 : f32 to vector<16x1xf32>
    %430 = arith.addf %426, %429 : vector<16x1xf32>
    %431 = math.rsqrt %430 : vector<16x1xf32>
    %432 = vector.broadcast %431 : vector<16x1xf32> to vector<16x128xf32>
    %433 = arith.mulf %428, %432 : vector<16x128xf32>
    %434 = vector.broadcast %412 : vector<1x128xf32> to vector<16x128xf32>
    %435 = arith.mulf %433, %434 : vector<16x128xf32>
    %436 = vector.broadcast %413 : vector<1x128xf32> to vector<16x128xf32>
    %437 = arith.addf %435, %436 : vector<16x128xf32>
    %438 = arith.truncf %437 : vector<16x128xf32> to vector<16x128xbf16>
    %c2048 = arith.constant 2048 : index
    %c0_142 = arith.constant 0 : index
    %439 = vector.load %arg3[%c2048, %c0_142] : memref<2176x128xbf16, #tpu.memory_space<vmem>>, vector<128x128xbf16>
    %cst_143 = arith.constant dense<0.000000e+00> : vector<16x128xf32>
    %440 = tpu.matmul %438, %439, %cst_143 {dimension_numbers = #tpu.dot_dimension_numbers<[1], [0], [0], [1], [0, 0, 1, 1], [], []>} : vector<16x128xbf16>, vector<128x128xbf16>, vector<16x128xf32> -> vector<16x128xf32>
    %c32 = arith.constant 32 : index
    %c0_144 = arith.constant 0 : index
    %441 = vector.load %arg4[%c32, %c0_144] : memref<40x128xf32, #tpu.memory_space<vmem>>, vector<1x128xf32>
    %442 = vector.broadcast %441 : vector<1x128xf32> to vector<16x128xf32>
    %443 = arith.addf %440, %442 : vector<16x128xf32>
    %c0_145 = arith.constant 0 : index
    %c0_146 = arith.constant 0 : index
    %444 = vector.load %arg5[%c0_145, %c0_146] : memref<16x128xf32, #tpu.memory_space<vmem>>, vector<16x128xf32>
    tpu.vector_store %arg5[%c0_145, %c0_146], %443 {strides = array<i32>} : memref<16x128xf32, #tpu.memory_space<vmem>>, vector<16x128xf32>,
    return
  }
  func.func @transform_0(%arg0: i32) -> (i32, i32) {
    %c0_i32 = arith.constant 0 : i32
    %c0_i32_0 = arith.constant 0 : i32
    %c0_i32_1 = arith.constant 0 : i32
    return %c0_i32, %c0_i32_0 : i32, i32
  }
  func.func @transform_1(%arg0: i32) -> (i32, i32) {
    %c0_i32 = arith.constant 0 : i32
    %c0_i32_0 = arith.constant 0 : i32
    %c0_i32_1 = arith.constant 0 : i32
    return %c0_i32, %c0_i32_0 : i32, i32
  }
  func.func @transform_2(%arg0: i32) -> (i32, i32) {
    %c0_i32 = arith.constant 0 : i32
    %c0_i32_0 = arith.constant 0 : i32
    %c0_i32_1 = arith.constant 0 : i32
    return %c0_i32, %c0_i32_0 : i32, i32
  }
  func.func @transform_3(%arg0: i32) -> (i32, i32) {
    %c0_i32 = arith.constant 0 : i32
    %c0_i32_0 = arith.constant 0 : i32
    %c0_i32_1 = arith.constant 0 : i32
    return %c0_i32, %c0_i32_0 : i32, i32
  }
  func.func @transform_4(%arg0: i32) -> (i32, i32) {
    %c0_i32 = arith.constant 0 : i32
    %c0_i32_0 = arith.constant 0 : i32
    %c0_i32_1 = arith.constant 0 : i32
    return %c0_i32, %c0_i32_0 : i32, i32
  }
}

</mosaic_0001>

<bundles_post_ra>
// kernel: policy_forward.1
= control target key start
LH: loop header
LB: loop body
LE: loop exit
PB: predicated region body
PF: predicated region fallthrough
CT: control target
= control target key end

     0   :  { %9 = vsyncpa [#allocation3], 0  ;;  %s3107_s18 = smov [#allocation2]   ;;  %s3108_s20 = smov 64   ;;  %s3484_s0 = inlined_call_operand.vmem [shape: f32[16,128], index: 0, kind: input, shape index: {}]   ;;  %s3485_s1 = inlined_call_operand.vmem [shape: f32[16,16], index: 1, kind: input, shape index: {}]   ;;  %s3486_s2 = inlined_call_operand.hbm [shape: bf16[2176,128], index: 2, kind: input, shape index: {}]   ;;  %s3487_s3 = inlined_call_operand.vmem [shape: f32[40,128], index: 3, kind: input, shape index: {}]   ;;  %s3488_s4 = inlined_call_operand.vmem [shape: f32[16,128], index: 4, kind: output, shape index: {}]  }
   0x1   :  { %s18_s17 = sshll.u32 %s3486_s2, 4  ;;  %s20_s19 = sshll.u32 %s3107_s18, 4  ;;  %s19_s17 = int_to_ptr.hbm [resolvable:$true] %s18_s17  ;;  %s21_s19 = int_to_ptr.vmem [resolvable:$true] %s20_s19 }
   0x2   :  { %s3109_s21 = smov 4  }
   0x3   :  { %26 = dma.hbm_to_vmem [thread:$0]  %s19_s17, 17408, %s21_s19, [#allocation3], %s3108_s20, %s3108_s20, %s3109_s21  }
   0x4   :  { %3105 = dma.done.wait [#allocation3], 17408  }
   0x5   :  { %3106 = vsyncadd [#allocation3], 4294949888  ;;  %v2822_v0 = vld [vmem:[#allocation2 + $0x38] sm:$0xff]  ;;  %v2821_v2 = vld [vmem:[#allocation2 + $0x30] sm:$0xff]  ;;  %vm302_vm0 = vcmask 130048  }
   0x6   :  { %v2830_v1 = vld [vmem:[#allocation2 + $0x78] sm:$0xff]  ;;  %109 = vmatpush.bf16.msra.mxu0 %v2822_v0  ;;  %v2829_v3 = vld [vmem:[#allocation2 + $0x70] sm:$0xff]  ;;  %v2820_v6 = vld [vmem:[#allocation2 + $0x28] sm:$0xff] }
   0x7   :  { %189 = vmatpush.bf16.msra.mxu1 %v2830_v1  ;;  %v2838_v4 = vld [vmem:[#allocation2 + $0xb8] sm:$0xff]  ;;  %v2837_v5 = vld [vmem:[#allocation2 + $0xb0] sm:$0xff]  ;;  %v2828_v7 = vld [vmem:[#allocation2 + $0x68] sm:$0xff] }
   0x8   :  { %269 = vmatpush.bf16.msra.mxu2 %v2838_v4  ;;  %v2819_v8 = vld [vmem:[#allocation2 + $0x20] sm:$0xff]  ;;  %v2836_v9 = vld [vmem:[#allocation2 + $0xa8] sm:$0xff]  ;;  %v2818_v12 = vld [vmem:[#allocation2 + $0x18] sm:$0xff] }
   0x9   :  { %v2827_v10 = vld [vmem:[#allocation2 + $0x60] sm:$0xff]  ;;  %v2826_v13 = vld [vmem:[#allocation2 + $0x58] sm:$0xff]  ;;  %v2817_v15 = vld [vmem:[#allocation2 + $0x10] sm:$0xff] }
   0xa   :  { %110 = vmatpush.bf16.msra.mxu0 %v2821_v2  ;;  %v2835_v11 = vld [vmem:[#allocation2 + $0xa0] sm:$0xff]  ;;  %v2834_v14 = vld [vmem:[#allocation2 + $0x98] sm:$0xff]  ;;  %v2825_v16 = vld [vmem:[#allocation2 + $0x50] sm:$0xff] }
   0xb   :  { %190 = vmatpush.bf16.msra.mxu1 %v2829_v3  ;;  %v2833_v17 = vld [vmem:[#allocation2 + $0x90] sm:$0xff]  ;;  %v2816_v18 = vld [vmem:[#allocation2 + $0x8] sm:$0xff]  ;;  %v2815_v21 = vld [vmem:[#allocation2] sm:$0xff] }
   0xc   :  { %270 = vmatpush.bf16.msra.mxu2 %v2837_v5  ;;  %v2824_v19 = vld [vmem:[#allocation2 + $0x48] sm:$0xff]  ;;  %v2823_v22 = vld [vmem:[#allocation2 + $0x40] sm:$0xff] }
   0xd   :  { %v2832_v20 = vld [vmem:[#allocation2 + $0x88] sm:$0xff]  ;;  %v3141_v23 = vld [vmem:[%s3484_s0] sm:$0xff] }
   0xe   :  { %111 = vmatpush.bf16.msra.mxu0 %v2820_v6  ;;  %v3146_v24 = vld [vmem:[%s3484_s0 + $0x8] sm:$0xff]  ;;  %v2831_v25 = vld [vmem:[#allocation2 + $0x80] sm:$0xff] }
   0xf   :  { %191 = vmatpush.bf16.msra.mxu1 %v2828_v7  ;;  %v42_v26 = vpack.c.bf16 %v3146_v24, %v3141_v23  ;;  %v2954_v29 = vld [vmem:[%s3487_s3] ss:$0 sm:$0xff]  ;;  %v2957_v30 = vld [vmem:[%s3487_s3 + $0x1] ss:$0 sm:$0xff]  ;;  %v3159_v32 = vld [vmem:[%s3487_s3 + $0x23] ss:$0 sm:$0xff] }
  0x10   :  { %271 = vmatpush.bf16.msra.mxu2 %v2836_v9  ;;  %v3164_v33 = vld [vmem:[%s3487_s3 + $0x24] ss:$0 sm:$0xff]  ;;  %v2958_v41 = vld [vmem:[%s3487_s3 + $0x2] ss:$0 sm:$0xff]  ;;  %v2960_v46 = vld [vmem:[%s3487_s3 + $0x21] ss:$0 sm:$0xff] }
  0x11   :  { %v2959_v51 = vld [vmem:[%s3487_s3 + $0x22] ss:$0 sm:$0xff]  ;;  %v3209_v2 = vld [vmem:[%s3485_s1 + $0x8] sm:$0xff] }
  0x12   :  { %112 = vmatpush.bf16.msra.mxu0 %v2819_v8  ;;  %v3199_v62 = vld [vmem:[%s3485_s1] sm:$0xff] }
  0x13   :  { %192 = vmatpush.bf16.msra.mxu1 %v2827_v10 }
  0x14   :  { %272 = vmatpush.bf16.msra.mxu2 %v2835_v11 }
  0x16   :  { %113 = vmatpush.bf16.msra.mxu0 %v2818_v12 }
  0x17   :  { %193 = vmatpush.bf16.msra.mxu1 %v2826_v13 }
  0x18   :  { %273 = vmatpush.bf16.msra.mxu2 %v2834_v14 }
  0x1a   :  { %114 = vmatpush.bf16.msra.mxu0 %v2817_v15 }
  0x1b   :  { %194 = vmatpush.bf16.msra.mxu1 %v2825_v16 }
  0x1c   :  { %274 = vmatpush.bf16.msra.mxu2 %v2833_v17 }
  0x1e   :  { %115 = vmatpush.bf16.msra.mxu0 %v2816_v18 }
  0x1f   :  { %195 = vmatpush.bf16.msra.mxu1 %v2824_v19 }
  0x20   :  { %275 = vmatpush.bf16.msra.mxu2 %v2832_v20 }
  0x22   :  { %116 = vmatpush.bf16.msra.mxu0 %v2815_v21 }
  0x23   :  { %196 = vmatpush.bf16.msra.mxu1 %v2823_v22 }
  0x24   :  { %276 = vmatpush.bf16.msra.mxu2 %v2831_v25 }
  0x25   :  { %117 = vmatmul.bf16.vlgmr.msra.gmra.mxu0 %v42_v26 }
  0x26   :  { %197 = vmatmul.bf16.vlgmr.msra.gmra.mxu1 %v42_v26 }
  0x27   :  { %277 = vmatmul.bf16.vlgmr.msra.gmra.mxu2 %v42_v26 }
  0xa2   :  { %v118_v27 = vpop.f32.mrf.mxu0 }
  0xa3   :  { %v198_v28 = vpop.f32.mrf.mxu1  ;;  %v119_v31 = vadd.f32 %v2954_v29, %v118_v27 }
  0xa4   :  { %v199_v36 = vadd.f32 %v2957_v30, %v198_v28 }
  0xa5   :  { %v3167_v40 = vmul.f32 %v3159_v32, %v119_v31  ;;  %v3173_v42 = vmul.f32 %v3164_v33, %v119_v31  ;;  %v285_v52 = vmul.f32 %v2960_v46, %v119_v31  ;;  %v330_v60 = vmul.f32 %v2959_v51, %v119_v31 }
  0xaa   :  { %v120_v34 = vpop.f32.mrf.mxu0  ;;  %v278_v39 = vpop.f32.mrf.mxu2 }
  0xab   :  { %v200_v35 = vpop.f32.mrf.mxu1  ;;  %v121_v37 = vadd.f32 %v2954_v29, %v120_v34  ;;  %v279_v49 = vadd.f32 %v2958_v41, %v278_v39 }
  0xac   :  { %v201_v38 = vadd.f32 %v2957_v30, %v200_v35 }
  0xad   :  { %v3176_v43 = vmul.f32 %v3159_v32, %v121_v37  ;;  %v3179_v44 = vmul.f32 %v3164_v33, %v121_v37  ;;  %v286_v50 = vmul.f32 %v2960_v46, %v121_v37  ;;  %v370_v54 = vmul.f32 %v2959_v51, %v279_v49 }
  0xae   :  { %v3181_v45 = vpack.c.bf16 %v201_v38, %v199_v36  ;;  %v331_v59 = vmul.f32 %v2959_v51, %v121_v37  ;;  %v511_v22 = vmul.f32 %v3164_v33, %v279_v49  ;;  %v326_v26 = vmul.f32 %v2960_v46, %v279_v49 }
  0xaf   :  { %v410_v47 = vpack.c.bf16 %v3176_v43, %v3167_v40  ;;  %v473_v48 = vpack.c.bf16 %v3179_v44, %v3173_v42  ;;  %v287_v55 = vpack.c.bf16 %v286_v50, %v285_v52  ;;  %v448_v28 = vmul.f32 %v3159_v32, %v279_v49 }
  0xb0   :  { %295 = vmatpush.bf16.xpose.msra.mxu3 %v3181_v45  ;;  %v332_v61 = vpack.c.bf16 %v331_v59, %v330_v60 }
  0xb2   :  { %v280_v53 = vpop.f32.mrf.mxu2 }
  0xb3   :  { %v281_v56 = vadd.f32 %v2958_v41, %v280_v53 }
  0xb5   :  { %v371_v57 = vmul.f32 %v2959_v51, %v281_v56  ;;  %v512_v25 = vmul.f32 %v3164_v33, %v281_v56  ;;  %v327_v27 = vmul.f32 %v2960_v46, %v281_v56  ;;  %v449_v29 = vmul.f32 %v3159_v32, %v281_v56 }
  0xb7   :  { %296 = vmatmul.bf16.vlgmr.msra.gmra.mxu3 %v287_v55  ;;  %v372_v58 = vpack.c.bf16 %v371_v57, %v370_v54  ;;  %v328_v30 = vpack.c.bf16 %v327_v27, %v326_v26  ;;  %v450_v31 = vpack.c.bf16 %v449_v29, %v448_v28  ;;  %v513_v34 = vpack.c.bf16 %v512_v25, %v511_v22 }
  0xb8   :  { %340 = vmatpush.bf16.xpose.msrb.mxu3 %v3181_v45 }
  0xb9   :  { %400 = vmatpush.bf16.msrb.mxu0 %v328_v30  ;;  %461 = vmatpush.bf16.msrb.mxu2 %v450_v31  ;;  %v2846_v31 = vld [vmem:[#allocation2 + $0xf8] sm:$0xff] }
  0xba   :  { %600 = vmatpush.bf16.msrb.mxu1 %v2846_v31 }
  0xbd   :  { %524 = vmatpush.bf16.msra.mxu0 %v513_v34  ;;  %v2845_v34 = vld [vmem:[#allocation2 + $0xf0] sm:$0xff] }
  0xbe   :  { %601 = vmatpush.bf16.msrb.mxu1 %v2845_v34 }
  0xc0   :  { %383 = vmatpush.bf16.msra.mxu3 %v372_v58 }
  0xc7   :  { %341 = vmatmul.bf16.vlgmr.msrb.gmra.mxu3 %v332_v61 }
  0xc8   :  { %418 = vmatpush.bf16.xpose.msrb.mxu3 %v3181_v45 }
 0x13a   :  { %v297_v63 = vpop.f32.mrf.mxu3 }
 0x13b   :  { %v3202_v0 = vadd.f32 %v297_v63, %v3199_v62 }
 0x13d   :  { %v303_v1 = vsel %vm302_vm0, %v3202_v0, -inf }
 0x13e   :  { %304 = vmax.xlane.f32.xlu2 %v303_v1 }
 0x142   :  { %v299_v3 = vpop.f32.mrf.mxu3 }
 0x143   :  { %v3212_v4 = vadd.f32 %v299_v3, %v3209_v2 }
 0x145   :  { %v306_v5 = vsel %vm302_vm0, %v3212_v4, -inf }
 0x146   :  { %307 = vmax.xlane.f32.xlu2 %v306_v5 }
 0x14a   :  { %v342_v6 = vpop.f32.mrf.mxu3 }
 0x14b   :  { %v343_v7 = vadd.f32 %v342_v6, %v3199_v62 }
 0x14d   :  { %v347_v8 = vsel %vm302_vm0, %v343_v7, -inf }
 0x14e   :  { %348 = vmax.xlane.f32.xlu0 %v347_v8 }
 0x152   :  { %v344_v9 = vpop.f32.mrf.mxu3 }
 0x153   :  { %v345_v10 = vadd.f32 %v344_v9, %v3209_v2 }
 0x155   :  { %v350_v11 = vsel %vm302_vm0, %v345_v10, -inf }
 0x156   :  { %351 = vmax.xlane.f32.xlu0 %v350_v11 }
 0x1b1   :  { %v305_v49 = vpop.xlane.xlu2 %304 }
 0x1b2   :  { %v309_v52 = vsub.f32 %v3202_v0, %v305_v49 }
 0x1b4   :  { %v311_v53 = vmul.f32 1.442695, %v309_v52 }
 0x1b9   :  { %v308_v40 = vpop.xlane.xlu2 %307 }
 0x1ba   :  { %v310_v42 = vsub.f32 %v3212_v4, %v308_v40  ;;  %v2843_v40 = vld [vmem:[#allocation2 + $0xe0] sm:$0xff] }
 0x1c1   :  { %v349_v12 = vpop.xlane.xlu0 %348 }
 0x1c2   :  { %v353_v13 = vsub.f32 %v343_v7, %v349_v12 }
 0x1c4   :  { %v355_v14 = vmul.f32 1.442695, %v353_v13 }
 0x1c6   :  { %2987 = vpow2.f32 %v355_v14 }
 0x1c9   :  { %v352_v15 = vpop.xlane.xlu0 %351 }
 0x1ca   :  { %v354_v16 = vsub.f32 %v345_v10, %v352_v15 }
 0x1cc   :  { %v2988_v17 = vpop.eup %2987  ;;  %v357_v18 = vmul.f32 1.442695, %v354_v16 }
 0x1cd   :  { %v359_v19 = vsel %vm302_vm0, %v2988_v17, 0.0 }
 0x1ce   :  { %2989 = vpow2.f32 %v357_v18  ;;  %360 = vadd.xlane.f32.xlu1 %v359_v19 }
 0x1d4   :  { %v2990_v20 = vpop.eup %2989 }
 0x1d5   :  { %v362_v21 = vsel %vm302_vm0, %v2990_v20, 0.0 }
 0x1d6   :  { %363 = vadd.xlane.f32.xlu1 %v362_v21 }
 0x241   :  { %v361_v35 = vpop.xlane.xlu1 %360 }
 0x242   :  { %2991 = vrcp.f32 %v361_v35 }
 0x248   :  { %v2992_v37 = vpop.eup %2991 }
 0x249   :  { %v364_v36 = vpop.xlane.xlu1 %363  ;;  %v367_v39 = vmul.f32 %v2992_v37, %v2988_v17 }
 0x24a   :  { %2993 = vrcp.f32 %v364_v36 }
 0x24b   :  { %2995 = vpow2.f32 %v311_v53  ;;  %v2844_v53 = vld [vmem:[#allocation2 + $0xe8] sm:$0xff] }
 0x24c   :  { %602 = vmatpush.bf16.msrb.mxu1 %v2844_v53 }
 0x250   :  { %v2994_v38 = vpop.eup %2993  ;;  %603 = vmatpush.bf16.msrb.mxu1 %v2843_v40 }
 0x251   :  { %v368_v33 = vmul.f32 %v2994_v38, %v2990_v20  ;;  %v2996_v54 = vpop.eup %2995 }
 0x252   :  { %v315_v58 = vsel %vm302_vm0, %v2996_v54, 0.0 }
 0x253   :  { %v369_v41 = vpack.c.bf16 %v368_v33, %v367_v39 }
 0x255   :  { %2359 = vmatmul.msk.bf16.vlgmr.msra.gmra.mxu3 %vm302_vm0, %v369_v41 }
 0x256   :  { %481 = vmatpush.bf16.xpose.msra.mxu3 %v3181_v45 }
 0x265   :  { %419 = vmatmul.bf16.vlgmr.msrb.gmra.mxu3 %v410_v47 }
 0x275   :  { %482 = vmatmul.bf16.vlgmr.msra.gmra.mxu3 %v473_v48  ;;  %v313_v48 = vmul.f32 1.442695, %v310_v42  ;;  %v2840_v42 = vld [vmem:[#allocation2 + $0xc8] sm:$0xff] }
 0x277   :  { %2997 = vpow2.f32 %v313_v48 }
 0x27d   :  { %v2998_v59 = vpop.eup %2997 }
 0x27e   :  { %v318_v0 = vsel %vm302_vm0, %v2998_v59, 0.0 }
 0x2d8   :  { %v3234_v32 = vpop.f32.mrf.mxu3 }
 0x2e0   :  { %v3236_v46 = vpop.f32.mrf.mxu3 }
 0x2e8   :  { %v420_v50 = vpop.f32.mrf.mxu3 }
 0x2e9   :  { %v421_v51 = vadd.f32 %v420_v50, %v3199_v62 }
 0x2eb   :  { %v425_v45 = vsel %vm302_vm0, %v421_v51, -inf }
 0x2ec   :  { %426 = vmax.xlane.f32.xlu0 %v425_v45 }
 0x2f0   :  { %v422_v43 = vpop.f32.mrf.mxu3 }
 0x2f1   :  { %v423_v47 = vadd.f32 %v422_v43, %v3209_v2  ;;  %v2842_v43 = vld [vmem:[#allocation2 + $0xd8] sm:$0xff] }
 0x2f2   :  { %604 = vmatpush.bf16.msrb.mxu1 %v2842_v43 }
 0x2f3   :  { %v428_v44 = vsel %vm302_vm0, %v423_v47, -inf }
 0x2f4   :  { %429 = vmax.xlane.f32.xlu1 %v428_v44  ;;  %v2839_v44 = vld [vmem:[#allocation2 + $0xc0] sm:$0xff] }
 0x2f8   :  { %v483_v55 = vpop.f32.mrf.mxu3 }
 0x2f9   :  { %v484_v56 = vadd.f32 %v483_v55, %v3199_v62 }
 0x2fb   :  { %v488_v57 = vsel %vm302_vm0, %v484_v56, -inf }
 0x2fc   :  { %489 = vmax.xlane.f32.xlu2 %v488_v57  ;;  %316 = vadd.xlane.f32.xlu1 %v315_v58 }
 0x300   :  { %v485_v60 = vpop.f32.mrf.mxu3 }
 0x301   :  { %v486_v61 = vadd.f32 %v485_v60, %v3209_v2 }
 0x303   :  { %v491_v63 = vsel %vm302_vm0, %v486_v61, -inf }
 0x304   :  { %492 = vmax.xlane.f32.xlu0 %v491_v63  ;;  %319 = vadd.xlane.f32.xlu2 %v318_v0 }
 0x35f   :  { %v427_v1 = vpop.xlane.xlu0 %426 }
 0x360   :  { %v431_v3 = vsub.f32 %v421_v51, %v427_v1 }
 0x362   :  { %v433_v62 = vmul.f32 1.442695, %v431_v3 }
 0x364   :  { %2999 = vpow2.f32 %v433_v62  ;;  %v2961_v62 = vld [vmem:[%s3487_s3 + $0x3] ss:$0 sm:$0xff] }
 0x367   :  { %v430_v4 = vpop.xlane.xlu1 %429 }
 0x368   :  { %v432_v5 = vsub.f32 %v423_v47, %v430_v4  ;;  %v2841_v47 = vld [vmem:[#allocation2 + $0xd0] sm:$0xff] }
 0x369   :  { %605 = vmatpush.bf16.msrb.mxu1 %v2841_v47 }
 0x36a   :  { %v3000_v6 = vpop.eup %2999  ;;  %v435_v7 = vmul.f32 1.442695, %v432_v5 }
 0x36b   :  { %v437_v8 = vsel %vm302_vm0, %v3000_v6, 0.0 }
 0x36c   :  { %3001 = vpow2.f32 %v435_v7  ;;  %438 = vadd.xlane.f32.xlu0 %v437_v8 }
 0x36d   :  { %606 = vmatpush.bf16.msrb.mxu1 %v2840_v42 }
 0x36f   :  { %v490_v9 = vpop.xlane.xlu2 %489  ;;  %v317_v12 = vpop.xlane.xlu1 %316 }
 0x370   :  { %v494_v2 = vsub.f32 %v484_v56, %v490_v9 }
 0x371   :  { %607 = vmatpush.bf16.msrb.mxu1 %v2839_v44 }
 0x372   :  { %v3002_v10 = vpop.eup %3001  ;;  %v496_v11 = vmul.f32 1.442695, %v494_v2 }
 0x373   :  { %v440_v13 = vsel %vm302_vm0, %v3002_v10, 0.0 }
 0x374   :  { %3003 = vpow2.f32 %v496_v11  ;;  %441 = vadd.xlane.f32.xlu1 %v440_v13 }
 0x375   :  { %3005 = vrcp.f32 %v317_v12 }
 0x377   :  { %v493_v14 = vpop.xlane.xlu0 %492  ;;  %v320_v15 = vpop.xlane.xlu2 %319 }
 0x378   :  { %v495_v16 = vsub.f32 %v486_v61, %v493_v14  ;;  %3007 = vrcp.f32 %v320_v15 }
 0x37a   :  { %v3004_v17 = vpop.eup %3003  ;;  %v498_v18 = vmul.f32 1.442695, %v495_v16 }
 0x37b   :  { %v500_v19 = vsel %vm302_vm0, %v3004_v17, 0.0  ;;  %v3006_v20 = vpop.eup %3005 }
 0x37c   :  { %3009 = vpow2.f32 %v498_v18  ;;  %501 = vadd.xlane.f32.xlu2 %v500_v19  ;;  %v323_v22 = vmul.f32 %v3006_v20, %v2996_v54 }
 0x37e   :  { %v3008_v21 = vpop.eup %3007 }
 0x37f   :  { %v324_v25 = vmul.f32 %v3008_v21, %v2998_v59 }
 0x381   :  { %v325_v26 = vpack.c.bf16 %v324_v25, %v323_v22 }
 0x382   :  { %v3010_v27 = vpop.eup %3009 }
 0x383   :  { %2360 = vmatmul.msk.bf16.vlgmr.msrb.gmra.mxu0 %vm302_vm0, %v325_v26  ;;  %v503_v28 = vsel %vm302_vm0, %v3010_v27, 0.0 }
 0x384   :  { %504 = vadd.xlane.f32.xlu0 %v503_v28 }
 0x3df   :  { %v439_v29 = vpop.xlane.xlu0 %438 }
 0x3e0   :  { %3011 = vrcp.f32 %v439_v29 }
 0x3e6   :  { %v3012_v35 = vpop.eup %3011 }
 0x3e7   :  { %v442_v30 = vpop.xlane.xlu1 %441  ;;  %v445_v37 = vmul.f32 %v3012_v35, %v3000_v6 }
 0x3e8   :  { %3013 = vrcp.f32 %v442_v30 }
 0x3ee   :  { %v3014_v36 = vpop.eup %3013 }
 0x3ef   :  { %v446_v38 = vmul.f32 %v3014_v36, %v3002_v10  ;;  %v502_v33 = vpop.xlane.xlu2 %501  ;;  %v2962_v36 = vld [vmem:[%s3487_s3 + $0x4] ss:$0 sm:$0xff] }
 0x3f0   :  { %3015 = vrcp.f32 %v502_v33  ;;  %v2963_v33 = vld [vmem:[%s3487_s3 + $0x5] ss:$0 sm:$0xff] }
 0x3f1   :  { %v447_v39 = vpack.c.bf16 %v446_v38, %v445_v37 }
 0x3f3   :  { %2361 = vmatmul.msk.bf16.vlgmr.msrb.gmra.mxu2 %vm302_vm0, %v447_v39 }
 0x3f6   :  { %v3016_v49 = vpop.eup %3015 }
 0x3f7   :  { %v505_v41 = vpop.xlane.xlu0 %504  ;;  %v508_v51 = vmul.f32 %v3016_v49, %v3004_v17 }
 0x3f8   :  { %3017 = vrcp.f32 %v505_v41 }
 0x3fe   :  { %v3018_v50 = vpop.eup %3017 }
 0x3ff   :  { %v509_v52 = vmul.f32 %v3018_v50, %v3010_v27  ;;  %v2964_v50 = vld [vmem:[%s3487_s3 + $0x6] ss:$0 sm:$0xff] }
 0x400   :  { %v402_v48 = vpop.f32.mrf.mxu0 }
 0x401   :  { %v510_v45 = vpack.c.bf16 %v509_v52, %v508_v51  ;;  %v403_v58 = vadd.f32 %v402_v48, %v3234_v32 }
 0x403   :  { %2362 = vmatmul.msk.bf16.vlgmr.msra.gmra.mxu0 %vm302_vm0, %v510_v45 }
 0x408   :  { %v404_v54 = vpop.f32.mrf.mxu0 }
 0x409   :  { %v405_v59 = vadd.f32 %v404_v54, %v3236_v46 }
 0x476   :  { %v463_v55 = vpop.f32.mrf.mxu2 }
 0x477   :  { %v468_v60 = vadd.f32 %v463_v55, %v403_v58  ;;  %v2853_v58 = vld [vmem:[#allocation2 + $0x130] sm:$0xff] }
 0x47e   :  { %v465_v57 = vpop.f32.mrf.mxu2 }
 0x47f   :  { %v469_v61 = vadd.f32 %v465_v57, %v405_v59  ;;  %v2862_v57 = vld [vmem:[#allocation2 + $0x178] sm:$0xff]  ;;  %v2861_v59 = vld [vmem:[#allocation2 + $0x170] sm:$0xff] }
 0x480   :  { %v526_v56 = vpop.f32.mrf.mxu0  ;;  %877 = vmatpush.bf16.msrb.mxu3 %v2862_v57 }
 0x481   :  { %v531_v0 = vadd.f32 %v526_v56, %v468_v60  ;;  %v2854_v56 = vld [vmem:[#allocation2 + $0x138] sm:$0xff]  ;;  %v2852_v60 = vld [vmem:[#allocation2 + $0x128] sm:$0xff] }
 0x482   :  { %795 = vmatpush.bf16.msra.mxu2 %v2854_v56 }
 0x484   :  { %878 = vmatpush.bf16.msrb.mxu3 %v2861_v59  ;;  %v2866_v59 = vld [vmem:[#allocation2 + $0x198] sm:$0xff] }
 0x486   :  { %796 = vmatpush.bf16.msra.mxu2 %v2853_v58  ;;  %v2874_v58 = vld [vmem:[#allocation2 + $0x1d8] sm:$0xff] }
 0x488   :  { %v528_v63 = vpop.f32.mrf.mxu0 }
 0x489   :  { %v532_v1 = vadd.f32 %v528_v63, %v469_v61  ;;  %v2860_v61 = vld [vmem:[#allocation2 + $0x168] sm:$0xff]  ;;  %v2851_v63 = vld [vmem:[#allocation2 + $0x120] sm:$0xff] }
 0x48a   :  { %797 = vmatpush.bf16.msra.mxu2 %v2852_v60  ;;  %879 = vmatpush.bf16.msrb.mxu3 %v2860_v61  ;;  %v2873_v60 = vld [vmem:[#allocation2 + $0x1d0] sm:$0xff]  ;;  %v2872_v61 = vld [vmem:[#allocation2 + $0x1c8] sm:$0xff] }
 0x48b   :  { %v533_v3 = vpack.c.bf16 %v532_v1, %v531_v0  ;;  %v2859_v0 = vld [vmem:[#allocation2 + $0x160] sm:$0xff]  ;;  %v2850_v1 = vld [vmem:[#allocation2 + $0x118] sm:$0xff] }
 0x48d   :  { %608 = vmatmul.bf16.vlgmr.msrb.gmra.mxu1 %v533_v3  ;;  %v2858_v3 = vld [vmem:[#allocation2 + $0x158] sm:$0xff] }
 0x48e   :  { %798 = vmatpush.bf16.msra.mxu2 %v2851_v63  ;;  %880 = vmatpush.bf16.msrb.mxu3 %v2859_v0  ;;  %v2864_v63 = vld [vmem:[#allocation2 + $0x188] sm:$0xff]  ;;  %v2871_v0 = vld [vmem:[#allocation2 + $0x1c0] sm:$0xff] }
 0x492   :  { %799 = vmatpush.bf16.msra.mxu2 %v2850_v1  ;;  %881 = vmatpush.bf16.msrb.mxu3 %v2858_v3  ;;  %v2863_v1 = vld [vmem:[#allocation2 + $0x180] sm:$0xff] }
 0x50a   :  { %v609_v4 = vpop.f32.mrf.mxu1 }
 0x50b   :  { %v610_v5 = vadd.f32 %v2961_v62, %v609_v4 }
 0x50d   :  { %v614_v6 = vadd.f32 %v610_v5, %v3141_v23  ;;  %v2849_v5 = vld [vmem:[#allocation2 + $0x110] sm:$0xff] }
 0x50e   :  { %800 = vmatpush.bf16.msra.mxu2 %v2849_v5  ;;  %v2968_v5 = vld [vmem:[%s3487_s3 + $0xa] ss:$0 sm:$0xff] }
 0x50f   :  { %618 = vadd.xlane.f32.xlu1 %v614_v6  ;;  %v624_v7 = vmul.f32 %v614_v6, %v614_v6 }
 0x511   :  { %626 = vadd.xlane.f32.xlu0 %v624_v7 }
 0x512   :  { %v611_v32 = vpop.f32.mrf.mxu1 }
 0x513   :  { %v612_v46 = vadd.f32 %v2961_v62, %v611_v32 }
 0x515   :  { %v615_v8 = vadd.f32 %v612_v46, %v3146_v24 }
 0x517   :  { %620 = vadd.xlane.f32.xlu2 %v615_v8  ;;  %v625_v9 = vmul.f32 %v615_v8, %v615_v8 }
 0x519   :  { %628 = vadd.xlane.f32.xlu1 %v625_v9  ;;  %v2848_v9 = vld [vmem:[#allocation2 + $0x108] sm:$0xff] }
 0x51a   :  { %801 = vmatpush.bf16.msra.mxu2 %v2848_v9 }
 0x582   :  { %v619_v2 = vpop.xlane.xlu1 %618 }
 0x583   :  { %v622_v10 = vmul.f32 0.015625, %v619_v2  ;;  %v2856_v2 = vld [vmem:[#allocation2 + $0x148] sm:$0xff] }
 0x584   :  { %v627_v11 = vpop.xlane.xlu0 %626 }
 0x585   :  { %v632_v12 = vmul.f32 %v622_v10, %v622_v10  ;;  %v630_v13 = vmul.f32 0.015625, %v627_v11  ;;  %v638_v34 = vsub.f32 %v614_v6, %v622_v10  ;;  %v2857_v6 = vld [vmem:[#allocation2 + $0x150] sm:$0xff]  ;;  %v2847_v11 = vld [vmem:[#allocation2 + $0x100] sm:$0xff] }
 0x586   :  { %882 = vmatpush.bf16.msrb.mxu3 %v2857_v6  ;;  %802 = vmatpush.bf16.msra.mxu2 %v2847_v11 }
 0x587   :  { %v634_v14 = vsub.f32 %v630_v13, %v632_v12  ;;  %v2855_v12 = vld [vmem:[#allocation2 + $0x140] sm:$0xff] }
 0x589   :  { %v636_v15 = vmax.f32 %v634_v14, 0.0 }
 0x58a   :  { %v621_v16 = vpop.xlane.xlu2 %620  ;;  %883 = vmatpush.bf16.msrb.mxu3 %v2856_v2 }
 0x58b   :  { %v640_v17 = vadd.f32 1e-05, %v636_v15  ;;  %v623_v23 = vmul.f32 0.015625, %v621_v16 }
 0x58c   :  { %v629_v18 = vpop.xlane.xlu1 %628 }
 0x58d   :  { %3019 = vrsqrt.f32 %v640_v17  ;;  %v633_v19 = vmul.f32 %v623_v23, %v623_v23  ;;  %v631_v20 = vmul.f32 0.015625, %v629_v18  ;;  %vm648_vm2 = vweird.f32 %v640_v17 }
 0x58e   :  { %v639_v40 = vsub.f32 %v615_v8, %v623_v23  ;;  %884 = vmatpush.bf16.msrb.mxu3 %v2855_v12 }
 0x58f   :  { %v635_v21 = vsub.f32 %v631_v20, %v633_v19  ;;  %v2878_v19 = vld [vmem:[#allocation2 + $0x1f8] sm:$0xff] }
 0x590   :  { %v2870_v20 = vld [vmem:[#allocation2 + $0x1b8] sm:$0xff]  ;;  %975 = vmatpush.bf16.msrb.mxu0 %v2878_v19 }
 0x591   :  { %v637_v22 = vmax.f32 %v635_v21, 0.0  ;;  %1037 = vmatpush.bf16.msra.mxu1 %v2870_v20 }
 0x593   :  { %v3020_v24 = vpop.eup %3019  ;;  %v641_v26 = vadd.f32 1e-05, %v637_v22  ;;  %v2877_v22 = vld [vmem:[#allocation2 + $0x1f0] sm:$0xff] }
 0x594   :  { %v643_v25 = vmul.f32 %v3020_v24, %v640_v17  ;;  %vm649_vm1 = vweird.f32 %v3020_v24  ;;  %976 = vmatpush.bf16.msrb.mxu0 %v2877_v22 }
 0x595   :  { %3021 = vrsqrt.f32 %v641_v26  ;;  %vm650_vm3 = vmor %vm648_vm2, %vm649_vm1  ;;  %vm658_vm5 = vweird.f32 %v641_v26 }
 0x596   :  { %v644_v27 = vmul.f32 %v3020_v24, %v643_v25 }
 0x598   :  { %v645_v28 = vmul.f32 0.5, %v644_v27 }
 0x59a   :  { %v646_v29 = vsub.f32 1.5, %v645_v28 }
 0x59b   :  { %v3022_v30 = vpop.eup %3021 }
 0x59c   :  { %v647_v31 = vmul.f32 %v3020_v24, %v646_v29  ;;  %v653_v35 = vmul.f32 %v3022_v30, %v641_v26  ;;  %vm659_vm4 = vweird.f32 %v3022_v30  ;;  %v2876_v29 = vld [vmem:[#allocation2 + $0x1e8] sm:$0xff] }
 0x59d   :  { %vm660_vm6 = vmor %vm658_vm5, %vm659_vm4  ;;  %977 = vmatpush.bf16.msrb.mxu0 %v2876_v29  ;;  %v2894_v29 = vld [vmem:[#allocation2 + $0x278] sm:$0xff] }
 0x59e   :  { %v651_v37 = vsel %vm650_vm3, %v3020_v24, %v647_v31  ;;  %v654_v38 = vmul.f32 %v3022_v30, %v653_v35  ;;  %v2869_v24 = vld [vmem:[#allocation2 + $0x1b0] sm:$0xff]  ;;  %v2875_v35 = vld [vmem:[#allocation2 + $0x1e0] sm:$0xff]  ;;  %1258 = vmatpush.bf16.msra.mxu3 %v2894_v29 }
 0x59f   :  { %v662_v39 = vmul.f32 %v651_v37, %v638_v34  ;;  %1038 = vmatpush.bf16.msra.mxu1 %v2869_v24 }
 0x5a0   :  { %v655_v41 = vmul.f32 0.5, %v654_v38 }
 0x5a1   :  { %v665_v49 = vmul.f32 %v2962_v36, %v662_v39  ;;  %978 = vmatpush.bf16.msrb.mxu0 %v2875_v35  ;;  %v2901_v35 = vld [vmem:[#allocation2 + $0x2b0] sm:$0xff] }
 0x5a2   :  { %v656_v51 = vsub.f32 1.5, %v655_v41 }
 0x5a3   :  { %v668_v52 = vadd.f32 %v2963_v33, %v665_v49 }
 0x5a4   :  { %v657_v45 = vmul.f32 %v3022_v30, %v656_v51 }
 0x5a5   :  { %v3273_v53 = vadd.f32 %v2964_v50, %v668_v52  ;;  %979 = vmatpush.bf16.msrb.mxu0 %v2874_v58 }
 0x5a6   :  { %v661_v47 = vsel %vm660_vm6, %v3022_v30, %v657_v45  ;;  %v2868_v30 = vld [vmem:[#allocation2 + $0x1a8] sm:$0xff]  ;;  %v2965_v45 = vld [vmem:[%s3487_s3 + $0x7] ss:$0 sm:$0xff] }
 0x5a7   :  { %676 = vadd.xlane.f32.xlu2 %v3273_v53  ;;  %v682_v43 = vmul.f32 %v3273_v53, %v3273_v53  ;;  %v663_v42 = vmul.f32 %v661_v47, %v639_v40  ;;  %1039 = vmatpush.bf16.msra.mxu1 %v2868_v30  ;;  %v2902_v30 = vld [vmem:[#allocation2 + $0x2b8] sm:$0xff] }
 0x5a9   :  { %684 = vadd.xlane.f32.xlu1 %v682_v43  ;;  %v666_v44 = vmul.f32 %v2962_v36, %v663_v42  ;;  %v2867_v36 = vld [vmem:[#allocation2 + $0x1a0] sm:$0xff]  ;;  %980 = vmatpush.bf16.msrb.mxu0 %v2873_v60 }
 0x5aa   :  { %v2887_v60 = vld [vmem:[#allocation2 + $0x240] sm:$0xff] }
 0x5ab   :  { %v669_v48 = vadd.f32 %v2963_v33, %v666_v44  ;;  %1040 = vmatpush.bf16.msra.mxu1 %v2867_v36  ;;  %v2884_v36 = vld [vmem:[#allocation2 + $0x228] sm:$0xff] }
 0x5ad   :  { %v3278_v54 = vadd.f32 %v2964_v50, %v669_v48  ;;  %v2966_v48 = vld [vmem:[%s3487_s3 + $0x8] ss:$0 sm:$0xff]  ;;  %981 = vmatpush.bf16.msrb.mxu0 %v2872_v61  ;;  %v2895_v61 = vld [vmem:[#allocation2 + $0x280] sm:$0xff] }
 0x5af   :  { %678 = vadd.xlane.f32.xlu0 %v3278_v54  ;;  %v683_v55 = vmul.f32 %v3278_v54, %v3278_v54  ;;  %1041 = vmatpush.bf16.msra.mxu1 %v2866_v59  ;;  %v2879_v59 = vld [vmem:[#allocation2 + $0x200] sm:$0xff] }
 0x5b1   :  { %686 = vadd.xlane.f32.xlu2 %v683_v55  ;;  %982 = vmatpush.bf16.msrb.mxu0 %v2871_v0 }
 0x5b5   :  { %1338 = vmatpush.bf16.msra.mxu0 %v2902_v30  ;;  %v2972_v30 = vld [vmem:[%s3487_s3 + $0x12] ss:$0 sm:$0xff] }
 0x5b9   :  { %1339 = vmatpush.bf16.msra.mxu0 %v2901_v35 }
 0x61a   :  { %v677_v62 = vpop.xlane.xlu2 %676 }
 0x61b   :  { %v3283_v4 = vmul.f32 0.015625, %v677_v62 }
 0x61c   :  { %v685_v7 = vpop.xlane.xlu1 %684 }
 0x61d   :  { %v690_v32 = vmul.f32 %v3283_v4, %v3283_v4  ;;  %v688_v46 = vmul.f32 0.015625, %v685_v7  ;;  %v696_v50 = vsub.f32 %v3273_v53, %v3283_v4  ;;  %v2967_v4 = vld [vmem:[%s3487_s3 + $0x9] ss:$0 sm:$0xff] }
 0x61f   :  { %v692_v8 = vsub.f32 %v688_v46, %v690_v32 }
 0x621   :  { %v694_v10 = vmax.f32 %v692_v8, 0.0 }
 0x622   :  { %v679_v14 = vpop.xlane.xlu0 %678 }
 0x623   :  { %v698_v13 = vadd.f32 1e-05, %v694_v10  ;;  %v681_v15 = vmul.f32 0.015625, %v679_v14 }
 0x624   :  { %v687_v16 = vpop.xlane.xlu2 %686 }
 0x625   :  { %3023 = vrsqrt.f32 %v698_v13  ;;  %v691_v17 = vmul.f32 %v681_v15, %v681_v15  ;;  %v689_v23 = vmul.f32 0.015625, %v687_v16  ;;  %vm706_vm8 = vweird.f32 %v698_v13 }
 0x626   :  { %v697_v43 = vsub.f32 %v3278_v54, %v681_v15  ;;  %v2865_v54 = vld [vmem:[#allocation2 + $0x190] sm:$0xff]  ;;  %v2969_v15 = vld [vmem:[%s3487_s3 + $0xb] ss:$0 sm:$0xff] }
 0x627   :  { %v693_v18 = vsub.f32 %v689_v23, %v691_v17  ;;  %1042 = vmatpush.bf16.msra.mxu1 %v2865_v54 }
 0x629   :  { %v695_v21 = vmax.f32 %v693_v18, 0.0 }
 0x62b   :  { %v3024_v25 = vpop.eup %3023  ;;  %v699_v27 = vadd.f32 1e-05, %v695_v21  ;;  %1043 = vmatpush.bf16.msra.mxu1 %v2864_v63 }
 0x62c   :  { %v701_v26 = vmul.f32 %v3024_v25, %v698_v13  ;;  %vm707_vm7 = vweird.f32 %v3024_v25 }
 0x62d   :  { %3025 = vrsqrt.f32 %v699_v27  ;;  %vm708_vm9 = vmor %vm706_vm8, %vm707_vm7  ;;  %vm716_vm11 = vweird.f32 %v699_v27 }
 0x62e   :  { %v702_v28 = vmul.f32 %v3024_v25, %v701_v26 }
 0x62f   :  { %1044 = vmatpush.bf16.msra.mxu1 %v2863_v1 }
 0x630   :  { %v703_v31 = vmul.f32 0.5, %v702_v28  ;;  %v2886_v28 = vld [vmem:[#allocation2 + $0x238] sm:$0xff] }
 0x631   :  { %1178 = vmatpush.bf16.msrb.mxu2 %v2886_v28 }
 0x632   :  { %v704_v34 = vsub.f32 1.5, %v703_v31  ;;  %v2885_v31 = vld [vmem:[#allocation2 + $0x230] sm:$0xff] }
 0x633   :  { %v3026_v37 = vpop.eup %3025 }
 0x634   :  { %v705_v38 = vmul.f32 %v3024_v25, %v704_v34  ;;  %v711_v39 = vmul.f32 %v3026_v37, %v699_v27  ;;  %vm717_vm10 = vweird.f32 %v3026_v37  ;;  %v2893_v34 = vld [vmem:[#allocation2 + $0x270] sm:$0xff] }
 0x635   :  { %vm718_vm12 = vmor %vm716_vm11, %vm717_vm10  ;;  %1179 = vmatpush.bf16.msrb.mxu2 %v2885_v31  ;;  %1259 = vmatpush.bf16.msra.mxu3 %v2893_v34 }
 0x636   :  { %v712_v33 = vmul.f32 %v3026_v37, %v711_v39  ;;  %v709_v41 = vsel %vm708_vm9, %v3024_v25, %v705_v38  ;;  %v2900_v38 = vld [vmem:[#allocation2 + $0x2a8] sm:$0xff]  ;;  %v2883_v39 = vld [vmem:[#allocation2 + $0x220] sm:$0xff] }
 0x637   :  { %v720_v52 = vmul.f32 %v709_v41, %v696_v50  ;;  %1340 = vmatpush.bf16.msra.mxu0 %v2900_v38  ;;  %v2899_v41 = vld [vmem:[#allocation2 + $0x2a0] sm:$0xff]  ;;  %v2890_v50 = vld [vmem:[#allocation2 + $0x258] sm:$0xff] }
 0x638   :  { %v713_v49 = vmul.f32 0.5, %v712_v33  ;;  %v2891_v33 = vld [vmem:[#allocation2 + $0x260] sm:$0xff] }
 0x639   :  { %v723_v44 = vmul.f32 %v2965_v45, %v720_v52  ;;  %1180 = vmatpush.bf16.msrb.mxu2 %v2884_v36  ;;  %v2973_v36 = vld [vmem:[%s3487_s3 + $0x10] ss:$0 sm:$0xff] }
 0x63a   :  { %v714_v51 = vsub.f32 1.5, %v713_v49  ;;  %v2882_v49 = vld [vmem:[#allocation2 + $0x218] sm:$0xff] }
 0x63b   :  { %v726_v55 = vadd.f32 %v2966_v48, %v723_v44  ;;  %1341 = vmatpush.bf16.msra.mxu0 %v2899_v41  ;;  %v3076_v41 = vld [vmem:[%s3487_s3 + $0x22] ss:$0 sm:$0xff] }
 0x63c   :  { %v715_v40 = vmul.f32 %v3026_v37, %v714_v51  ;;  %v2898_v51 = vld [vmem:[#allocation2 + $0x298] sm:$0xff] }
 0x63d   :  { %1181 = vmatpush.bf16.msrb.mxu2 %v2883_v39  ;;  %v3075_v39 = vld [vmem:[%s3487_s3 + $0x21] ss:$0 sm:$0xff] }
 0x63e   :  { %v719_v47 = vsel %vm718_vm12, %v3026_v37, %v715_v40  ;;  %v2892_v37 = vld [vmem:[#allocation2 + $0x268] sm:$0xff]  ;;  %v2881_v40 = vld [vmem:[#allocation2 + $0x210] sm:$0xff] }
 0x63f   :  { %v721_v42 = vmul.f32 %v719_v47, %v697_v43  ;;  %1260 = vmatpush.bf16.msra.mxu3 %v2892_v37  ;;  %1342 = vmatpush.bf16.msra.mxu0 %v2898_v51  ;;  %v2889_v43 = vld [vmem:[#allocation2 + $0x250] sm:$0xff] }
 0x640   :  { %v2897_v47 = vld [vmem:[#allocation2 + $0x290] sm:$0xff] }
 0x641   :  { %v724_v53 = vmul.f32 %v2965_v45, %v721_v42  ;;  %1182 = vmatpush.bf16.msrb.mxu2 %v2882_v49 }
 0x643   :  { %v727_v56 = vadd.f32 %v2966_v48, %v724_v53  ;;  %1261 = vmatpush.bf16.msra.mxu3 %v2891_v33  ;;  %1343 = vmatpush.bf16.msra.mxu0 %v2897_v47 }
 0x645   :  { %v728_v57 = vpack.c.bf16 %v727_v56, %v726_v55  ;;  %1183 = vmatpush.bf16.msrb.mxu2 %v2881_v40 }
 0x647   :  { %803 = vmatmul.bf16.vlgmr.msra.gmra.mxu2 %v728_v57  ;;  %885 = vmatmul.bf16.vlgmr.msrb.gmra.mxu3 %v728_v57  ;;  %v2896_v57 = vld [vmem:[#allocation2 + $0x288] sm:$0xff] }
 0x648   :  { %1262 = vmatpush.bf16.msra.mxu3 %v2890_v50  ;;  %1344 = vmatpush.bf16.msra.mxu0 %v2896_v57  ;;  %v3077_v50 = vld [vmem:[%s3487_s3 + $0x24] ss:$0 sm:$0xff] }
 0x64c   :  { %1263 = vmatpush.bf16.msra.mxu3 %v2889_v43  ;;  %1345 = vmatpush.bf16.msra.mxu0 %v2895_v61 }
 0x6ca   :  { %v804_v3 = vpop.f32.mrf.mxu2  ;;  %v886_v62 = vpop.f32.mrf.mxu3 }
 0x6cb   :  { %v805_v6 = vadd.f32 %v2967_v4, %v804_v3  ;;  %v887_v7 = vadd.f32 %v2968_v5, %v886_v62 }
 0x6cd   :  { %v809_v2 = vmax.f32 %v805_v6, 0.0  ;;  %v891_v10 = vmax.f32 %v887_v7, 0.0 }
 0x6d2   :  { %v806_v32 = vpop.f32.mrf.mxu2  ;;  %v888_v46 = vpop.f32.mrf.mxu3 }
 0x6d3   :  { %v807_v8 = vadd.f32 %v2967_v4, %v806_v32  ;;  %v889_v9 = vadd.f32 %v2968_v5, %v888_v46 }
 0x6d5   :  { %v810_v11 = vmax.f32 %v807_v8, 0.0  ;;  %v892_v12 = vmax.f32 %v889_v9, 0.0 }
 0x6d7   :  { %v893_v13 = vpack.c.bf16 %v810_v11, %v809_v2  ;;  %v910_v14 = vpack.c.bf16 %v892_v12, %v891_v10 }
 0x6d9   :  { %983 = vmatmul.bf16.vlgmr.msrb.gmra.mxu0 %v910_v14  ;;  %1045 = vmatmul.bf16.vlgmr.msra.gmra.mxu1 %v893_v13 }
 0x756   :  { %v984_v16 = vpop.f32.mrf.mxu0  ;;  %v1046_v17 = vpop.f32.mrf.mxu1 }
 0x757   :  { %v1047_v23 = vadd.f32 %v1046_v17, %v984_v16 }
 0x759   :  { %v1053_v18 = vadd.f32 %v2969_v15, %v1047_v23  ;;  %v2970_v23 = vld [vmem:[%s3487_s3 + $0xc] ss:$0 sm:$0xff] }
 0x75b   :  { %v3305_v19 = vadd.f32 %v1053_v18, %v726_v55  ;;  %v2880_v55 = vld [vmem:[#allocation2 + $0x208] sm:$0xff] }
 0x75c   :  { %1184 = vmatpush.bf16.msrb.mxu2 %v2880_v55 }
 0x75d   :  { %1059 = vadd.xlane.f32.xlu0 %v3305_v19  ;;  %v1065_v20 = vmul.f32 %v3305_v19, %v3305_v19 }
 0x75e   :  { %v986_v21 = vpop.f32.mrf.mxu0  ;;  %v1048_v22 = vpop.f32.mrf.mxu1 }
 0x75f   :  { %v1049_v24 = vadd.f32 %v1048_v22, %v986_v21  ;;  %1067 = vadd.xlane.f32.xlu2 %v1065_v20 }
 0x760   :  { %1185 = vmatpush.bf16.msrb.mxu2 %v2879_v59  ;;  %v3078_v59 = vld [vmem:[%s3487_s3 + $0x23] ss:$0 sm:$0xff] }
 0x761   :  { %v1054_v25 = vadd.f32 %v2969_v15, %v1049_v24 }
 0x763   :  { %v3310_v26 = vadd.f32 %v1054_v25, %v727_v56  ;;  %v2888_v56 = vld [vmem:[#allocation2 + $0x248] sm:$0xff] }
 0x764   :  { %1264 = vmatpush.bf16.msra.mxu3 %v2888_v56  ;;  %v2971_v25 = vld [vmem:[%s3487_s3 + $0xd] ss:$0 sm:$0xff] }
 0x765   :  { %1061 = vadd.xlane.f32.xlu1 %v3310_v26  ;;  %v1066_v27 = vmul.f32 %v3310_v26, %v3310_v26 }
 0x767   :  { %1069 = vadd.xlane.f32.xlu0 %v1066_v27 }
 0x768   :  { %1265 = vmatpush.bf16.msra.mxu3 %v2887_v60 }
 0x7d0   :  { %v1060_v52 = vpop.xlane.xlu0 %1059 }
 0x7d1   :  { %v1063_v45 = vmul.f32 0.015625, %v1060_v52  ;;  %v2974_v52 = vld [vmem:[%s3487_s3 + $0x11] ss:$0 sm:$0xff] }
 0x7d2   :  { %v1068_v42 = vpop.xlane.xlu2 %1067 }
 0x7d3   :  { %v1073_v44 = vmul.f32 %v1063_v45, %v1063_v45  ;;  %v1071_v48 = vmul.f32 0.015625, %v1068_v42  ;;  %v1079_v15 = vsub.f32 %v3305_v19, %v1063_v45 }
 0x7d5   :  { %v1075_v53 = vsub.f32 %v1071_v48, %v1073_v44 }
 0x7d7   :  { %v1077_v58 = vmax.f32 %v1075_v53, 0.0 }
 0x7d8   :  { %v1062_v54 = vpop.xlane.xlu1 %1061 }
 0x7d9   :  { %v1081_v63 = vadd.f32 1e-05, %v1077_v58  ;;  %v1064_v0 = vmul.f32 0.015625, %v1062_v54 }
 0x7da   :  { %v1070_v1 = vpop.xlane.xlu0 %1069 }
 0x7db   :  { %3027 = vrsqrt.f32 %v1081_v63  ;;  %v1074_v3 = vmul.f32 %v1064_v0, %v1064_v0  ;;  %v1072_v62 = vmul.f32 0.015625, %v1070_v1  ;;  %vm1089_vm14 = vweird.f32 %v1081_v63 }
 0x7dc   :  { %v1080_v20 = vsub.f32 %v3310_v26, %v1064_v0 }
 0x7dd   :  { %v1076_v4 = vsub.f32 %v1072_v62, %v1074_v3 }
 0x7df   :  { %v1078_v5 = vmax.f32 %v1076_v4, 0.0 }
 0x7e1   :  { %v3028_v6 = vpop.eup %3027  ;;  %v1082_v32 = vadd.f32 1e-05, %v1078_v5 }
 0x7e2   :  { %v1084_v7 = vmul.f32 %v3028_v6, %v1081_v63  ;;  %vm1090_vm13 = vweird.f32 %v3028_v6 }
 0x7e3   :  { %3029 = vrsqrt.f32 %v1082_v32  ;;  %vm1091_vm15 = vmor %vm1089_vm14, %vm1090_vm13  ;;  %vm1099_vm2 = vweird.f32 %v1082_v32 }
 0x7e4   :  { %v1085_v46 = vmul.f32 %v3028_v6, %v1084_v7 }
 0x7e6   :  { %v1086_v8 = vmul.f32 0.5, %v1085_v46 }
 0x7e8   :  { %v1087_v9 = vsub.f32 1.5, %v1086_v8 }
 0x7e9   :  { %v3030_v2 = vpop.eup %3029 }
 0x7ea   :  { %v1088_v10 = vmul.f32 %v3028_v6, %v1087_v9  ;;  %v1094_v11 = vmul.f32 %v3030_v2, %v1082_v32  ;;  %vm1100_vm1 = vweird.f32 %v3030_v2 }
 0x7eb   :  { %vm1101_vm3 = vmor %vm1099_vm2, %vm1100_vm1 }
 0x7ec   :  { %v1095_v12 = vmul.f32 %v3030_v2, %v1094_v11  ;;  %v1092_v13 = vsel %vm1091_vm15, %v3028_v6, %v1088_v10  ;;  %v3359_v11 = vld [vmem:[%s3485_s1] sm:$0xff] }
 0x7ed   :  { %v1103_v17 = vmul.f32 %v1092_v13, %v1079_v15 }
 0x7ee   :  { %v1096_v14 = vmul.f32 0.5, %v1095_v12 }
 0x7ef   :  { %v1106_v24 = vmul.f32 %v2970_v23, %v1103_v17 }
 0x7f0   :  { %v1097_v16 = vsub.f32 1.5, %v1096_v14 }
 0x7f1   :  { %v3323_v27 = vadd.f32 %v2971_v25, %v1106_v24 }
 0x7f2   :  { %v1098_v18 = vmul.f32 %v3030_v2, %v1097_v16  ;;  %v3366_v16 = vld [vmem:[%s3485_s1 + $0x8] sm:$0xff] }
 0x7f4   :  { %v1102_v21 = vsel %vm1101_vm3, %v3030_v2, %v1098_v18 }
 0x7f5   :  { %v1104_v22 = vmul.f32 %v1102_v21, %v1080_v20 }
 0x7f7   :  { %v1107_v19 = vmul.f32 %v2970_v23, %v1104_v22 }
 0x7f9   :  { %v3325_v28 = vadd.f32 %v2971_v25, %v1107_v19 }
 0x7fb   :  { %v1111_v29 = vpack.c.bf16 %v3325_v28, %v3323_v27 }
 0x7fd   :  { %1186 = vmatmul.bf16.vlgmr.msrb.gmra.mxu2 %v1111_v29  ;;  %1266 = vmatmul.bf16.vlgmr.msra.gmra.mxu3 %v1111_v29 }
 0x7fe   :  { %1346 = vmatmul.bf16.vlgmr.msra.gmra.mxu0 %v1111_v29 }
 0x87b   :  { %v1347_v26 = vpop.f32.mrf.mxu0 }
 0x87c   :  { %v1348_v35 = vadd.f32 %v2972_v30, %v1347_v26 }
 0x87e   :  { %v1393_v33 = vmul.f32 %v3075_v39, %v1348_v35  ;;  %v1436_v49 = vmul.f32 %v3076_v41, %v1348_v35  ;;  %v1575_v51 = vmul.f32 %v3077_v50, %v1348_v35  ;;  %v1513_v63 = vmul.f32 %v3078_v59, %v1348_v35 }
 0x880   :  { %v1187_v31 = vpop.f32.mrf.mxu2  ;;  %v1267_v34 = vpop.f32.mrf.mxu3 }
 0x881   :  { %v1188_v47 = vadd.f32 %v2973_v36, %v1187_v31  ;;  %v1268_v58 = vadd.f32 %v2974_v52, %v1267_v34 }
 0x883   :  { %v1349_v37 = vpop.f32.mrf.mxu0  ;;  %v3350_v54 = vmul.f32 %v3077_v50, %v1188_v47  ;;  %v1353_v5 = vmul.f32 %v3075_v39, %v1188_v47  ;;  %v1396_v6 = vmul.f32 %v3076_v41, %v1188_v47  ;;  %v1473_v8 = vmul.f32 %v3078_v59, %v1188_v47 }
 0x884   :  { %v1350_v38 = vadd.f32 %v2972_v30, %v1349_v37 }
 0x886   :  { %v1394_v45 = vmul.f32 %v3075_v39, %v1350_v38  ;;  %v1437_v40 = vmul.f32 %v3076_v41, %v1350_v38  ;;  %v1576_v43 = vmul.f32 %v3077_v50, %v1350_v38  ;;  %v1514_v60 = vmul.f32 %v3078_v59, %v1350_v38 }
 0x888   :  { %v1189_v42 = vpop.f32.mrf.mxu2  ;;  %v1269_v44 = vpop.f32.mrf.mxu3  ;;  %v1438_v48 = vpack.c.bf16 %v1437_v40, %v1436_v49  ;;  %v1395_v53 = vpack.c.bf16 %v1394_v45, %v1393_v33  ;;  %v1577_v55 = vpack.c.bf16 %v1576_v43, %v1575_v51  ;;  %v1515_v3 = vpack.c.bf16 %v1514_v60, %v1513_v63 }
 0x889   :  { %v1190_v56 = vadd.f32 %v2973_v36, %v1189_v42  ;;  %v1270_v57 = vadd.f32 %v2974_v52, %v1269_v44 }
 0x88a   :  { %1449 = vmatpush.bf16.msrb.mxu3 %v1438_v48  ;;  %1466 = vmatpush.bf16.msrb.mxu0 %v1395_v53 }
 0x88b   :  { %v3352_v61 = vmul.f32 %v3077_v50, %v1190_v56  ;;  %v1352_v0 = vpack.c.bf16 %v1270_v57, %v1268_v58  ;;  %v1354_v62 = vmul.f32 %v3075_v39, %v1190_v56  ;;  %v1397_v4 = vmul.f32 %v3076_v41, %v1190_v56 }
 0x88c   :  { %v1474_v46 = vmul.f32 %v3078_v59, %v1190_v56 }
 0x88d   :  { %v1537_v1 = vpack.c.bf16 %v3352_v61, %v3350_v54  ;;  %1363 = vmatpush.bf16.xpose.msrb.mxu1 %v1352_v0  ;;  %1406 = vmatpush.bf16.xpose.msra.mxu2 %v1352_v0  ;;  %v1355_v7 = vpack.c.bf16 %v1354_v62, %v1353_v5  ;;  %v1398_v32 = vpack.c.bf16 %v1397_v4, %v1396_v6 }
 0x88e   :  { %1588 = vmatpush.bf16.msra.mxu0 %v1577_v55  ;;  %1545 = vmatpush.bf16.xpose.msra.mxu3 %v1352_v0  ;;  %v1475_v9 = vpack.c.bf16 %v1474_v46, %v1473_v8 }
 0x894   :  { %1364 = vmatmul.bf16.vlgmr.msrb.gmra.mxu1 %v1355_v7  ;;  %1407 = vmatmul.bf16.vlgmr.msra.gmra.mxu2 %v1398_v32 }
 0x895   :  { %1483 = vmatpush.bf16.xpose.msra.mxu1 %v1352_v0  ;;  %1526 = vmatpush.bf16.msrb.mxu2 %v1515_v3 }
 0x8a4   :  { %1484 = vmatmul.bf16.vlgmr.msra.gmra.mxu1 %v1475_v9 }
 0x911   :  { %v1365_v2 = vpop.f32.mrf.mxu1 }
 0x912   :  { %v1366_v20 = vadd.f32 %v3359_v11, %v1365_v2 }
 0x914   :  { %v1370_v21 = vsel %vm302_vm0, %v1366_v20, -inf }
 0x917   :  { %v1408_v10 = vpop.f32.mrf.mxu2 }
 0x918   :  { %v1409_v12 = vadd.f32 %v3359_v11, %v1408_v10 }
 0x919   :  { %v1367_v13 = vpop.f32.mrf.mxu1 }
 0x91a   :  { %v1413_v14 = vsel %vm302_vm0, %v1409_v12, -inf  ;;  %v1368_v37 = vadd.f32 %v3366_v16, %v1367_v13 }
 0x91b   :  { %1414 = vmax.xlane.f32.xlu1 %v1413_v14 }
 0x91c   :  { %v1373_v50 = vsel %vm302_vm0, %v1368_v37, -inf }
 0x91f   :  { %v1410_v15 = vpop.f32.mrf.mxu2 }
 0x920   :  { %v1411_v17 = vadd.f32 %v3366_v16, %v1410_v15 }
 0x921   :  { %v1485_v23 = vpop.f32.mrf.mxu1 }
 0x922   :  { %v1416_v18 = vsel %vm302_vm0, %v1411_v17, -inf  ;;  %v1486_v51 = vadd.f32 %v3359_v11, %v1485_v23 }
 0x923   :  { %1417 = vmax.xlane.f32.xlu2 %v1416_v18 }
 0x924   :  { %v1490_v47 = vsel %vm302_vm0, %v1486_v51, -inf }
 0x929   :  { %v1487_v22 = vpop.f32.mrf.mxu1 }
 0x92a   :  { %v1488_v24 = vadd.f32 %v3366_v16, %v1487_v22 }
 0x92b   :  { %1371 = vmax.xlane.f32.xlu2 %v1370_v21 }
 0x92c   :  { %v1493_v25 = vsel %vm302_vm0, %v1488_v24, -inf }
 0x933   :  { %1494 = vmax.xlane.f32.xlu2 %v1493_v25 }
 0x98e   :  { %v1415_v19 = vpop.xlane.xlu1 %1414 }
 0x98f   :  { %v1419_v29 = vsub.f32 %v1409_v12, %v1415_v19 }
 0x991   :  { %v1421_v26 = vmul.f32 1.442695, %v1419_v29 }
 0x993   :  { %3031 = vpow2.f32 %v1421_v26 }
 0x996   :  { %v1418_v30 = vpop.xlane.xlu2 %1417 }
 0x997   :  { %v1420_v31 = vsub.f32 %v1411_v17, %v1418_v30 }
 0x999   :  { %v3032_v34 = vpop.eup %3031  ;;  %v1423_v35 = vmul.f32 1.442695, %v1420_v31 }
 0x99a   :  { %v1425_v36 = vsel %vm302_vm0, %v3032_v34, 0.0 }
 0x99b   :  { %3033 = vpow2.f32 %v1423_v35  ;;  %1426 = vadd.xlane.f32.xlu0 %v1425_v36 }
 0x99e   :  { %v1372_v38 = vpop.xlane.xlu2 %1371 }
 0x99f   :  { %v1376_v39 = vsub.f32 %v1366_v20, %v1372_v38 }
 0x9a1   :  { %v3034_v33 = vpop.eup %3033  ;;  %v1378_v41 = vmul.f32 1.442695, %v1376_v39 }
 0x9a2   :  { %v1428_v49 = vsel %vm302_vm0, %v3034_v33, 0.0 }
 0x9a3   :  { %3035 = vpow2.f32 %v1378_v41  ;;  %1429 = vadd.xlane.f32.xlu1 %v1428_v49  ;;  %1374 = vmax.xlane.f32.xlu0 %v1373_v50  ;;  %v2910_v49 = vld [vmem:[#allocation2 + $0x2f8] sm:$0xff]  ;;  %v2909_v50 = vld [vmem:[#allocation2 + $0x2f0] sm:$0xff] }
 0x9a4   :  { %1664 = vmatpush.bf16.msrb.mxu1 %v2910_v49  ;;  %v2977_v49 = vld [vmem:[%s3487_s3 + $0x15] ss:$0 sm:$0xff] }
 0x9a6   :  { %v1495_v52 = vpop.xlane.xlu2 %1494 }
 0x9a7   :  { %v1497_v45 = vsub.f32 %v1488_v24, %v1495_v52  ;;  %v2908_v52 = vld [vmem:[#allocation2 + $0x2e8] sm:$0xff] }
 0x9a8   :  { %1665 = vmatpush.bf16.msrb.mxu1 %v2909_v50 }
 0x9a9   :  { %v3379_v40 = vpop.eup %3035  ;;  %v1500_v43 = vmul.f32 1.442695, %v1497_v45 }
 0x9aa   :  { %v1382_v42 = vsel %vm302_vm0, %v3379_v40, 0.0 }
 0x9ab   :  { %3037 = vpow2.f32 %v1500_v43  ;;  %1491 = vmax.xlane.f32.xlu1 %v1490_v47  ;;  %1383 = vadd.xlane.f32.xlu2 %v1382_v42  ;;  %v2907_v42 = vld [vmem:[#allocation2 + $0x2e0] sm:$0xff] }
 0x9ac   :  { %1666 = vmatpush.bf16.msrb.mxu1 %v2908_v52  ;;  %v2978_v52 = vld [vmem:[%s3487_s3 + $0x16] ss:$0 sm:$0xff] }
 0x9b0   :  { %1667 = vmatpush.bf16.msrb.mxu1 %v2907_v42 }
 0x9b1   :  { %v3384_v44 = vpop.eup %3037 }
 0x9b2   :  { %v1505_v48 = vsel %vm302_vm0, %v3384_v44, 0.0 }
 0x9b3   :  { %1506 = vadd.xlane.f32.xlu2 %v1505_v48  ;;  %v2905_v48 = vld [vmem:[#allocation2 + $0x2d0] sm:$0xff] }
 0xa0e   :  { %v1427_v53 = vpop.xlane.xlu0 %1426 }
 0xa0f   :  { %3039 = vrcp.f32 %v1427_v53  ;;  %v2904_v53 = vld [vmem:[#allocation2 + $0x2c8] sm:$0xff] }
 0xa15   :  { %v3040_v56 = vpop.eup %3039 }
 0xa16   :  { %v1430_v55 = vpop.xlane.xlu1 %1429  ;;  %v1433_v58 = vmul.f32 %v3040_v56, %v3032_v34  ;;  %v1375_v0 = vpop.xlane.xlu0 %1374 }
 0xa17   :  { %3041 = vrcp.f32 %v1430_v55  ;;  %v1377_v62 = vsub.f32 %v1368_v37, %v1375_v0  ;;  %v2903_v55 = vld [vmem:[#allocation2 + $0x2c0] sm:$0xff] }
 0xa19   :  { %v1380_v4 = vmul.f32 1.442695, %v1377_v62 }
 0xa1b   :  { %3043 = vpow2.f32 %v1380_v4 }
 0xa1d   :  { %v3042_v57 = vpop.eup %3041 }
 0xa1e   :  { %v1434_v59 = vmul.f32 %v3042_v57, %v3034_v33  ;;  %v1492_v5 = vpop.xlane.xlu1 %1491  ;;  %v1384_v14 = vpop.xlane.xlu2 %1383 }
 0xa1f   :  { %v1496_v32 = vsub.f32 %v1486_v51, %v1492_v5 }
 0xa20   :  { %v1435_v60 = vpack.c.bf16 %v1434_v59, %v1433_v58 }
 0xa21   :  { %v1498_v8 = vmul.f32 1.442695, %v1496_v32  ;;  %v3044_v9 = vpop.eup %3043 }
 0xa22   :  { %2619 = vmatmul.msk.bf16.vlgmr.msrb.gmra.mxu3 %vm302_vm0, %v1435_v60  ;;  %v1385_v2 = vsel %vm302_vm0, %v3044_v9, 0.0 }
 0xa23   :  { %3045 = vpow2.f32 %v1498_v8  ;;  %v2975_v8 = vld [vmem:[%s3487_s3 + $0x13] ss:$0 sm:$0xff] }
 0xa26   :  { %v1507_v21 = vpop.xlane.xlu2 %1506 }
 0xa29   :  { %v3046_v10 = vpop.eup %3045 }
 0xa32   :  { %1546 = vmatmul.bf16.vlgmr.msra.gmra.mxu3 %v1537_v1 }
 0xaa5   :  { %v3392_v63 = vpop.f32.mrf.mxu3 }
 0xaad   :  { %v3394_v3 = vpop.f32.mrf.mxu3 }
 0xab5   :  { %v1547_v6 = vpop.f32.mrf.mxu3 }
 0xab6   :  { %v1548_v7 = vadd.f32 %v3359_v11, %v1547_v6  ;;  %v1502_v11 = vsel %vm302_vm0, %v3046_v10, 0.0 }
 0xab8   :  { %v1552_v46 = vsel %vm302_vm0, %v1548_v7, -inf }
 0xab9   :  { %1553 = vmax.xlane.f32.xlu0 %v1552_v46 }
 0xabd   :  { %v1549_v54 = vpop.f32.mrf.mxu3 }
 0xabe   :  { %v1550_v61 = vadd.f32 %v3366_v16, %v1549_v54 }
 0xac0   :  { %v1555_v1 = vsel %vm302_vm0, %v1550_v61, -inf }
 0xac1   :  { %1556 = vmax.xlane.f32.xlu1 %v1555_v1  ;;  %1386 = vadd.xlane.f32.xlu0 %v1385_v2 }
 0xac9   :  { %1503 = vadd.xlane.f32.xlu1 %v1502_v11 }
 0xb2c   :  { %v1554_v12 = vpop.xlane.xlu0 %1553 }
 0xb2d   :  { %v1558_v13 = vsub.f32 %v1548_v7, %v1554_v12 }
 0xb2f   :  { %v1560_v15 = vmul.f32 1.442695, %v1558_v13 }
 0xb31   :  { %3047 = vpow2.f32 %v1560_v15 }
 0xb32   :  { %3049 = vrcp.f32 %v1384_v14 }
 0xb34   :  { %v1557_v17 = vpop.xlane.xlu1 %1556  ;;  %v1387_v23 = vpop.xlane.xlu0 %1386 }
 0xb35   :  { %v1559_v16 = vsub.f32 %v1550_v61, %v1557_v17  ;;  %3051 = vrcp.f32 %v1387_v23 }
 0xb37   :  { %v3048_v18 = vpop.eup %3047  ;;  %v1562_v20 = vmul.f32 1.442695, %v1559_v16 }
 0xb38   :  { %v1564_v22 = vsel %vm302_vm0, %v3048_v18, 0.0  ;;  %v3050_v24 = vpop.eup %3049 }
 0xb39   :  { %3053 = vpow2.f32 %v1562_v20  ;;  %1565 = vadd.xlane.f32.xlu0 %v1564_v22  ;;  %v1390_v19 = vmul.f32 %v3050_v24, %v3379_v40 }
 0xb3a   :  { %3055 = vrcp.f32 %v1507_v21 }
 0xb3b   :  { %v3052_v25 = vpop.eup %3051 }
 0xb3c   :  { %v1391_v29 = vmul.f32 %v3052_v25, %v3044_v9  ;;  %v1504_v26 = vpop.xlane.xlu1 %1503 }
 0xb3d   :  { %3057 = vrcp.f32 %v1504_v26 }
 0xb3e   :  { %v1392_v30 = vpack.c.bf16 %v1391_v29, %v1390_v19 }
 0xb3f   :  { %v3054_v31 = vpop.eup %3053 }
 0xb40   :  { %2620 = vmatmul.msk.bf16.vlgmr.msrb.gmra.mxu0 %vm302_vm0, %v1392_v30  ;;  %v1567_v34 = vsel %vm302_vm0, %v3054_v31, 0.0  ;;  %v3056_v35 = vpop.eup %3055 }
 0xb41   :  { %1568 = vadd.xlane.f32.xlu1 %v1567_v34  ;;  %v1511_v37 = vmul.f32 %v3056_v35, %v3384_v44  ;;  %v2906_v44 = vld [vmem:[#allocation2 + $0x2d8] sm:$0xff] }
 0xb42   :  { %1668 = vmatpush.bf16.msrb.mxu1 %v2906_v44 }
 0xb43   :  { %v3058_v36 = vpop.eup %3057 }
 0xb44   :  { %v1510_v38 = vmul.f32 %v3058_v36, %v3046_v10 }
 0xb46   :  { %v1512_v39 = vpack.c.bf16 %v1511_v37, %v1510_v38  ;;  %1669 = vmatpush.bf16.msrb.mxu1 %v2905_v48  ;;  %v2976_v38 = vld [vmem:[%s3487_s3 + $0x14] ss:$0 sm:$0xff] }
 0xb48   :  { %2621 = vmatmul.msk.bf16.vlgmr.msrb.gmra.mxu2 %vm302_vm0, %v1512_v39 }
 0xb4a   :  { %1670 = vmatpush.bf16.msrb.mxu1 %v2904_v53 }
 0xb4e   :  { %1671 = vmatpush.bf16.msrb.mxu1 %v2903_v55 }
 0xbac   :  { %v1566_v33 = vpop.xlane.xlu0 %1565 }
 0xbad   :  { %3059 = vrcp.f32 %v1566_v33 }
 0xbb3   :  { %v3060_v51 = vpop.eup %3059 }
 0xbb4   :  { %v1569_v41 = vpop.xlane.xlu1 %1568  ;;  %v1572_v40 = vmul.f32 %v3060_v51, %v3048_v18 }
 0xbb5   :  { %3061 = vrcp.f32 %v1569_v41 }
 0xbbb   :  { %v3062_v45 = vpop.eup %3061 }
 0xbbc   :  { %v1573_v43 = vmul.f32 %v3062_v45, %v3054_v31 }
 0xbbd   :  { %v1468_v56 = vpop.f32.mrf.mxu0 }
 0xbbe   :  { %v1574_v47 = vpack.c.bf16 %v1573_v43, %v1572_v40  ;;  %v1469_v0 = vadd.f32 %v1468_v56, %v3392_v63 }
 0xbc0   :  { %2622 = vmatmul.msk.bf16.vlgmr.msra.gmra.mxu0 %vm302_vm0, %v1574_v47 }
 0xbc5   :  { %v1470_v57 = vpop.f32.mrf.mxu0 }
 0xbc6   :  { %v1471_v62 = vadd.f32 %v1470_v57, %v3394_v3 }
 0xbcb   :  { %v1528_v58 = vpop.f32.mrf.mxu2 }
 0xbcc   :  { %v1533_v4 = vadd.f32 %v1528_v58, %v1469_v0  ;;  %v2917_v0 = vld [vmem:[#allocation2 + $0x330] sm:$0xff] }
 0xbd3   :  { %v1530_v60 = vpop.f32.mrf.mxu2 }
 0xbd4   :  { %v1534_v5 = vadd.f32 %v1530_v60, %v1471_v62  ;;  %v2926_v60 = vld [vmem:[#allocation2 + $0x378] sm:$0xff]  ;;  %v2925_v62 = vld [vmem:[#allocation2 + $0x370] sm:$0xff] }
 0xbd5   :  { %1941 = vmatpush.bf16.msrb.mxu3 %v2926_v60 }
 0xbd9   :  { %1942 = vmatpush.bf16.msrb.mxu3 %v2925_v62  ;;  %v2930_v62 = vld [vmem:[#allocation2 + $0x398] sm:$0xff] }
 0xc3d   :  { %v1590_v59 = vpop.f32.mrf.mxu0 }
 0xc3e   :  { %v1595_v7 = vadd.f32 %v1590_v59, %v1533_v4  ;;  %v2918_v59 = vld [vmem:[#allocation2 + $0x338] sm:$0xff]  ;;  %v2916_v4 = vld [vmem:[#allocation2 + $0x328] sm:$0xff] }
 0xc3f   :  { %1859 = vmatpush.bf16.msra.mxu2 %v2918_v59 }
 0xc43   :  { %1860 = vmatpush.bf16.msra.mxu2 %v2917_v0  ;;  %v2938_v0 = vld [vmem:[#allocation2 + $0x3d8] sm:$0xff] }
 0xc45   :  { %v1592_v6 = vpop.f32.mrf.mxu0 }
 0xc46   :  { %v1596_v32 = vadd.f32 %v1592_v6, %v1534_v5  ;;  %v2924_v5 = vld [vmem:[#allocation2 + $0x368] sm:$0xff]  ;;  %v2915_v6 = vld [vmem:[#allocation2 + $0x320] sm:$0xff] }
 0xc47   :  { %1861 = vmatpush.bf16.msra.mxu2 %v2916_v4  ;;  %1943 = vmatpush.bf16.msrb.mxu3 %v2924_v5  ;;  %v2937_v4 = vld [vmem:[#allocation2 + $0x3d0] sm:$0xff]  ;;  %v2936_v5 = vld [vmem:[#allocation2 + $0x3c8] sm:$0xff] }
 0xc48   :  { %v1597_v46 = vpack.c.bf16 %v1596_v32, %v1595_v7  ;;  %v2923_v7 = vld [vmem:[#allocation2 + $0x360] sm:$0xff]  ;;  %v2914_v32 = vld [vmem:[#allocation2 + $0x318] sm:$0xff] }
 0xc4a   :  { %1672 = vmatmul.bf16.vlgmr.msrb.gmra.mxu1 %v1597_v46  ;;  %v2922_v46 = vld [vmem:[#allocation2 + $0x358] sm:$0xff] }
 0xc4b   :  { %1862 = vmatpush.bf16.msra.mxu2 %v2915_v6  ;;  %1944 = vmatpush.bf16.msrb.mxu3 %v2923_v7  ;;  %v2928_v6 = vld [vmem:[#allocation2 + $0x388] sm:$0xff]  ;;  %v2935_v7 = vld [vmem:[#allocation2 + $0x3c0] sm:$0xff] }
 0xc4f   :  { %1863 = vmatpush.bf16.msra.mxu2 %v2914_v32  ;;  %1945 = vmatpush.bf16.msrb.mxu3 %v2922_v46  ;;  %v2927_v32 = vld [vmem:[#allocation2 + $0x380] sm:$0xff] }
 0xcc7   :  { %v1673_v9 = vpop.f32.mrf.mxu1 }
 0xcc8   :  { %v1674_v54 = vadd.f32 %v2975_v8, %v1673_v9 }
 0xcca   :  { %v1678_v61 = vadd.f32 %v1674_v54, %v3323_v27  ;;  %v2913_v54 = vld [vmem:[#allocation2 + $0x310] sm:$0xff] }
 0xccb   :  { %1864 = vmatpush.bf16.msra.mxu2 %v2913_v54  ;;  %v2982_v54 = vld [vmem:[%s3487_s3 + $0x1a] ss:$0 sm:$0xff] }
 0xccc   :  { %1682 = vadd.xlane.f32.xlu2 %v1678_v61  ;;  %v1688_v1 = vmul.f32 %v1678_v61, %v1678_v61 }
 0xcce   :  { %1690 = vadd.xlane.f32.xlu1 %v1688_v1 }
 0xccf   :  { %v1675_v63 = vpop.f32.mrf.mxu1 }
 0xcd0   :  { %v1676_v3 = vadd.f32 %v2975_v8, %v1675_v63 }
 0xcd2   :  { %v1679_v2 = vadd.f32 %v1676_v3, %v3325_v28 }
 0xcd4   :  { %1684 = vadd.xlane.f32.xlu0 %v1679_v2  ;;  %v1689_v10 = vmul.f32 %v1679_v2, %v1679_v2 }
 0xcd6   :  { %1692 = vadd.xlane.f32.xlu2 %v1689_v10  ;;  %v2912_v10 = vld [vmem:[#allocation2 + $0x308] sm:$0xff] }
 0xcd7   :  { %1865 = vmatpush.bf16.msra.mxu2 %v2912_v10 }
 0xd3f   :  { %v1683_v11 = vpop.xlane.xlu2 %1682 }
 0xd40   :  { %v1686_v12 = vmul.f32 0.015625, %v1683_v11  ;;  %v2920_v11 = vld [vmem:[#allocation2 + $0x348] sm:$0xff] }
 0xd41   :  { %v1691_v13 = vpop.xlane.xlu1 %1690 }
 0xd42   :  { %v1696_v14 = vmul.f32 %v1686_v12, %v1686_v12  ;;  %v1694_v15 = vmul.f32 0.015625, %v1691_v13  ;;  %v1702_v36 = vsub.f32 %v1678_v61, %v1686_v12  ;;  %v2921_v61 = vld [vmem:[#allocation2 + $0x350] sm:$0xff]  ;;  %v2911_v13 = vld [vmem:[#allocation2 + $0x300] sm:$0xff] }
 0xd43   :  { %1946 = vmatpush.bf16.msrb.mxu3 %v2921_v61  ;;  %1866 = vmatpush.bf16.msra.mxu2 %v2911_v13 }
 0xd44   :  { %v1698_v17 = vsub.f32 %v1694_v15, %v1696_v14  ;;  %v2919_v14 = vld [vmem:[#allocation2 + $0x340] sm:$0xff] }
 0xd46   :  { %v1700_v23 = vmax.f32 %v1698_v17, 0.0 }
 0xd47   :  { %v1685_v16 = vpop.xlane.xlu0 %1684  ;;  %1947 = vmatpush.bf16.msrb.mxu3 %v2920_v11 }
 0xd48   :  { %v1704_v18 = vadd.f32 1e-05, %v1700_v23  ;;  %v1687_v27 = vmul.f32 0.015625, %v1685_v16 }
 0xd49   :  { %v1693_v20 = vpop.xlane.xlu2 %1692 }
 0xd4a   :  { %3063 = vrsqrt.f32 %v1704_v18  ;;  %v1697_v21 = vmul.f32 %v1687_v27, %v1687_v27  ;;  %v1695_v22 = vmul.f32 0.015625, %v1693_v20  ;;  %vm1712_vm4 = vweird.f32 %v1704_v18 }
 0xd4b   :  { %v1703_v42 = vsub.f32 %v1679_v2, %v1687_v27  ;;  %1948 = vmatpush.bf16.msrb.mxu3 %v2919_v14 }
 0xd4c   :  { %v1699_v24 = vsub.f32 %v1695_v22, %v1697_v21  ;;  %v2942_v21 = vld [vmem:[#allocation2 + $0x3f8] sm:$0xff] }
 0xd4d   :  { %v2934_v22 = vld [vmem:[#allocation2 + $0x3b8] sm:$0xff]  ;;  %2039 = vmatpush.bf16.msrb.mxu0 %v2942_v21 }
 0xd4e   :  { %v1701_v25 = vmax.f32 %v1699_v24, 0.0  ;;  %2101 = vmatpush.bf16.msra.mxu1 %v2934_v22 }
 0xd50   :  { %v3064_v28 = vpop.eup %3063  ;;  %v1705_v29 = vadd.f32 1e-05, %v1701_v25  ;;  %v2941_v25 = vld [vmem:[#allocation2 + $0x3f0] sm:$0xff] }
 0xd51   :  { %v1707_v19 = vmul.f32 %v3064_v28, %v1704_v18  ;;  %vm1713_vm0 = vweird.f32 %v3064_v28  ;;  %2040 = vmatpush.bf16.msrb.mxu0 %v2941_v25 }
 0xd52   :  { %3065 = vrsqrt.f32 %v1705_v29  ;;  %vm1714_vm5 = vmor %vm1712_vm4, %vm1713_vm0  ;;  %vm1722_vm7 = vweird.f32 %v1705_v29 }
 0xd53   :  { %v1708_v26 = vmul.f32 %v3064_v28, %v1707_v19 }
 0xd55   :  { %v1709_v30 = vmul.f32 0.5, %v1708_v26 }
 0xd57   :  { %v1710_v31 = vsub.f32 1.5, %v1709_v30 }
 0xd58   :  { %v3066_v34 = vpop.eup %3065 }
 0xd59   :  { %v1711_v35 = vmul.f32 %v3064_v28, %v1710_v31  ;;  %v1717_v37 = vmul.f32 %v3066_v34, %v1705_v29  ;;  %vm1723_vm6 = vweird.f32 %v3066_v34  ;;  %v2940_v31 = vld [vmem:[#allocation2 + $0x3e8] sm:$0xff] }
 0xd5a   :  { %vm1724_vm8 = vmor %vm1722_vm7, %vm1723_vm6  ;;  %2041 = vmatpush.bf16.msrb.mxu0 %v2940_v31  ;;  %v2949_v31 = vld [vmem:[#allocation2 + $0x430] sm:$0xff] }
 0xd5b   :  { %v1715_v39 = vsel %vm1714_vm5, %v3064_v28, %v1711_v35  ;;  %v1718_v33 = vmul.f32 %v3066_v34, %v1717_v37  ;;  %v2933_v28 = vld [vmem:[#allocation2 + $0x3b0] sm:$0xff]  ;;  %v2939_v37 = vld [vmem:[#allocation2 + $0x3e0] sm:$0xff] }
 0xd5c   :  { %v1726_v41 = vmul.f32 %v1715_v39, %v1702_v36  ;;  %2102 = vmatpush.bf16.msra.mxu1 %v2933_v28 }
 0xd5d   :  { %v1719_v50 = vmul.f32 0.5, %v1718_v33 }
 0xd5e   :  { %v1729_v51 = vmul.f32 %v2976_v38, %v1726_v41  ;;  %2042 = vmatpush.bf16.msrb.mxu0 %v2939_v37 }
 0xd5f   :  { %v1720_v45 = vsub.f32 1.5, %v1719_v50 }
 0xd60   :  { %v1732_v40 = vadd.f32 %v2977_v49, %v1729_v51 }
 0xd61   :  { %v1721_v43 = vmul.f32 %v3066_v34, %v1720_v45 }
 0xd62   :  { %v3425_v47 = vadd.f32 %v2978_v52, %v1732_v40  ;;  %2043 = vmatpush.bf16.msrb.mxu0 %v2938_v0 }
 0xd63   :  { %v1725_v48 = vsel %vm1724_vm8, %v3066_v34, %v1721_v43  ;;  %v2932_v34 = vld [vmem:[#allocation2 + $0x3a8] sm:$0xff]  ;;  %v2979_v43 = vld [vmem:[%s3487_s3 + $0x17] ss:$0 sm:$0xff] }
 0xd64   :  { %1740 = vadd.xlane.f32.xlu0 %v3425_v47  ;;  %v1746_v44 = vmul.f32 %v3425_v47, %v3425_v47  ;;  %v1727_v53 = vmul.f32 %v1725_v48, %v1703_v42  ;;  %2103 = vmatpush.bf16.msra.mxu1 %v2932_v34  ;;  %v2948_v34 = vld [vmem:[#allocation2 + $0x428] sm:$0xff] }
 0xd66   :  { %1748 = vadd.xlane.f32.xlu2 %v1746_v44  ;;  %v1730_v55 = vmul.f32 %v2976_v38, %v1727_v53  ;;  %v2931_v38 = vld [vmem:[#allocation2 + $0x3a0] sm:$0xff]  ;;  %2044 = vmatpush.bf16.msrb.mxu0 %v2937_v4 }
 0xd68   :  { %v1733_v56 = vadd.f32 %v2977_v49, %v1730_v55  ;;  %2104 = vmatpush.bf16.msra.mxu1 %v2931_v38 }
 0xd6a   :  { %v3430_v57 = vadd.f32 %v2978_v52, %v1733_v56  ;;  %v2980_v56 = vld [vmem:[%s3487_s3 + $0x18] ss:$0 sm:$0xff]  ;;  %2045 = vmatpush.bf16.msrb.mxu0 %v2936_v5 }
 0xd6c   :  { %1742 = vadd.xlane.f32.xlu1 %v3430_v57  ;;  %v1747_v58 = vmul.f32 %v3430_v57, %v3430_v57  ;;  %2105 = vmatpush.bf16.msra.mxu1 %v2930_v62 }
 0xd6e   :  { %1750 = vadd.xlane.f32.xlu0 %v1747_v58  ;;  %2046 = vmatpush.bf16.msrb.mxu0 %v2935_v7 }
 0xdd7   :  { %v1741_v8 = vpop.xlane.xlu0 %1740 }
 0xdd8   :  { %v3435_v9 = vmul.f32 0.015625, %v1741_v8 }
 0xdd9   :  { %v1749_v1 = vpop.xlane.xlu2 %1748 }
 0xdda   :  { %v1754_v63 = vmul.f32 %v3435_v9, %v3435_v9  ;;  %v1752_v3 = vmul.f32 0.015625, %v1749_v1  ;;  %v1760_v52 = vsub.f32 %v3425_v47, %v3435_v9  ;;  %v2981_v9 = vld [vmem:[%s3487_s3 + $0x19] ss:$0 sm:$0xff] }
 0xddc   :  { %v1756_v2 = vsub.f32 %v1752_v3, %v1754_v63 }
 0xdde   :  { %v1758_v12 = vmax.f32 %v1756_v2, 0.0 }
 0xddf   :  { %v1743_v17 = vpop.xlane.xlu1 %1742 }
 0xde0   :  { %v1762_v15 = vadd.f32 1e-05, %v1758_v12  ;;  %v1745_v23 = vmul.f32 0.015625, %v1743_v17 }
 0xde1   :  { %v1751_v16 = vpop.xlane.xlu0 %1750 }
 0xde2   :  { %3067 = vrsqrt.f32 %v1762_v15  ;;  %v1755_v18 = vmul.f32 %v1745_v23, %v1745_v23  ;;  %v1753_v27 = vmul.f32 0.015625, %v1751_v16  ;;  %vm1770_vm10 = vweird.f32 %v1762_v15 }
 0xde3   :  { %v1761_v44 = vsub.f32 %v3430_v57, %v1745_v23  ;;  %v2929_v57 = vld [vmem:[#allocation2 + $0x390] sm:$0xff]  ;;  %v2983_v23 = vld [vmem:[%s3487_s3 + $0x1b] ss:$0 sm:$0xff] }
 0xde4   :  { %v1757_v20 = vsub.f32 %v1753_v27, %v1755_v18  ;;  %2106 = vmatpush.bf16.msra.mxu1 %v2929_v57 }
 0xde6   :  { %v1759_v24 = vmax.f32 %v1757_v20, 0.0 }
 0xde8   :  { %v3068_v19 = vpop.eup %3067  ;;  %v1763_v26 = vadd.f32 1e-05, %v1759_v24  ;;  %2107 = vmatpush.bf16.msra.mxu1 %v2928_v6 }
 0xde9   :  { %v1765_v29 = vmul.f32 %v3068_v19, %v1762_v15  ;;  %vm1771_vm9 = vweird.f32 %v3068_v19 }
 0xdea   :  { %3069 = vrsqrt.f32 %v1763_v26  ;;  %vm1772_vm11 = vmor %vm1770_vm10, %vm1771_vm9  ;;  %vm1780_vm13 = vweird.f32 %v1763_v26 }
 0xdeb   :  { %v1766_v30 = vmul.f32 %v3068_v19, %v1765_v29 }
 0xdec   :  { %2108 = vmatpush.bf16.msra.mxu1 %v2927_v32 }
 0xded   :  { %v1767_v35 = vmul.f32 0.5, %v1766_v30  ;;  %v2950_v30 = vld [vmem:[#allocation2 + $0x438] sm:$0xff] }
 0xdee   :  { %2242 = vmatpush.bf16.msrb.mxu2 %v2950_v30 }
 0xdef   :  { %v1768_v36 = vsub.f32 1.5, %v1767_v35  ;;  %v2947_v35 = vld [vmem:[#allocation2 + $0x420] sm:$0xff] }
 0xdf0   :  { %v3070_v39 = vpop.eup %3069 }
 0xdf1   :  { %v1769_v33 = vmul.f32 %v3068_v19, %v1768_v36  ;;  %v1775_v41 = vmul.f32 %v3070_v39, %v1763_v26  ;;  %vm1781_vm12 = vweird.f32 %v3070_v39  ;;  %v2946_v36 = vld [vmem:[#allocation2 + $0x418] sm:$0xff] }
 0xdf2   :  { %vm1782_vm14 = vmor %vm1780_vm13, %vm1781_vm12  ;;  %2243 = vmatpush.bf16.msrb.mxu2 %v2949_v31 }
 0xdf3   :  { %v1776_v49 = vmul.f32 %v3070_v39, %v1775_v41  ;;  %v1773_v50 = vsel %vm1772_vm11, %v3068_v19, %v1769_v33 }
 0xdf4   :  { %v1784_v40 = vmul.f32 %v1773_v50, %v1760_v52 }
 0xdf5   :  { %v1777_v51 = vmul.f32 0.5, %v1776_v49 }
 0xdf6   :  { %v1787_v55 = vmul.f32 %v2979_v43, %v1784_v40  ;;  %2244 = vmatpush.bf16.msrb.mxu2 %v2948_v34 }
 0xdf7   :  { %v1778_v45 = vsub.f32 1.5, %v1777_v51  ;;  %v2944_v51 = vld [vmem:[#allocation2 + $0x408] sm:$0xff] }
 0xdf8   :  { %v1790_v58 = vadd.f32 %v2980_v56, %v1787_v55 }
 0xdf9   :  { %v1779_v42 = vmul.f32 %v3070_v39, %v1778_v45  ;;  %v2943_v45 = vld [vmem:[#allocation2 + $0x400] sm:$0xff] }
 0xdfa   :  { %2245 = vmatpush.bf16.msrb.mxu2 %v2947_v35 }
 0xdfb   :  { %v1783_v48 = vsel %vm1782_vm14, %v3070_v39, %v1779_v42  ;;  %v2945_v39 = vld [vmem:[#allocation2 + $0x410] sm:$0xff] }
 0xdfc   :  { %v1785_v53 = vmul.f32 %v1783_v48, %v1761_v44 }
 0xdfe   :  { %v1788_v47 = vmul.f32 %v2979_v43, %v1785_v53  ;;  %2246 = vmatpush.bf16.msrb.mxu2 %v2946_v36 }
 0xe00   :  { %v1791_v59 = vadd.f32 %v2980_v56, %v1788_v47 }
 0xe02   :  { %v1792_v60 = vpack.c.bf16 %v1791_v59, %v1790_v58  ;;  %2247 = vmatpush.bf16.msrb.mxu2 %v2945_v39 }
 0xe04   :  { %1867 = vmatmul.bf16.vlgmr.msra.gmra.mxu2 %v1792_v60  ;;  %1949 = vmatmul.bf16.vlgmr.msrb.gmra.mxu3 %v1792_v60 }
 0xe06   :  { %2248 = vmatpush.bf16.msrb.mxu2 %v2944_v51 }
 0xe0a   :  { %2249 = vmatpush.bf16.msrb.mxu2 %v2943_v45 }
 0xe87   :  { %v1868_v46 = vpop.f32.mrf.mxu2  ;;  %v1950_v8 = vpop.f32.mrf.mxu3 }
 0xe88   :  { %v1869_v61 = vadd.f32 %v2981_v9, %v1868_v46  ;;  %v1951_v1 = vadd.f32 %v2982_v54, %v1950_v8 }
 0xe8a   :  { %v1873_v11 = vmax.f32 %v1869_v61, 0.0  ;;  %v1955_v12 = vmax.f32 %v1951_v1, 0.0 }
 0xe8f   :  { %v1870_v63 = vpop.f32.mrf.mxu2  ;;  %v1952_v3 = vpop.f32.mrf.mxu3 }
 0xe90   :  { %v1871_v2 = vadd.f32 %v2981_v9, %v1870_v63  ;;  %v1953_v10 = vadd.f32 %v2982_v54, %v1952_v3  ;;  %v2984_v54 = vld [vmem:[%s3487_s3 + $0x1c] ss:$0 sm:$0xff] }
 0xe92   :  { %v1874_v13 = vmax.f32 %v1871_v2, 0.0  ;;  %v1956_v14 = vmax.f32 %v1953_v10, 0.0  ;;  %v2985_v10 = vld [vmem:[%s3487_s3 + $0x1d] ss:$0 sm:$0xff] }
 0xe94   :  { %v1957_v15 = vpack.c.bf16 %v1874_v13, %v1873_v11  ;;  %v1974_v17 = vpack.c.bf16 %v1956_v14, %v1955_v12 }
 0xe96   :  { %2047 = vmatmul.bf16.vlgmr.msrb.gmra.mxu0 %v1974_v17  ;;  %2109 = vmatmul.bf16.vlgmr.msra.gmra.mxu1 %v1957_v15  ;;  %v2986_v15 = vld [vmem:[%s3487_s3 + $0x20] ss:$0 sm:$0xff] }
 0xf13   :  { %v2048_v16 = vpop.f32.mrf.mxu0  ;;  %v2110_v18 = vpop.f32.mrf.mxu1 }
 0xf14   :  { %v2111_v27 = vadd.f32 %v2110_v18, %v2048_v16 }
 0xf16   :  { %v2117_v20 = vadd.f32 %v2983_v23, %v2111_v27 }
 0xf18   :  { %v3457_v21 = vadd.f32 %v2117_v20, %v1790_v58 }
 0xf1a   :  { %2123 = vadd.xlane.f32.xlu1 %v3457_v21  ;;  %v2129_v22 = vmul.f32 %v3457_v21, %v3457_v21 }
 0xf1b   :  { %v2050_v24 = vpop.f32.mrf.mxu0  ;;  %v2112_v25 = vpop.f32.mrf.mxu1 }
 0xf1c   :  { %v2113_v28 = vadd.f32 %v2112_v25, %v2050_v24  ;;  %2131 = vadd.xlane.f32.xlu0 %v2129_v22 }
 0xf1e   :  { %v2118_v19 = vadd.f32 %v2983_v23, %v2113_v28 }
 0xf20   :  { %v3462_v29 = vadd.f32 %v2118_v19, %v1791_v59 }
 0xf22   :  { %2125 = vadd.xlane.f32.xlu2 %v3462_v29  ;;  %v2130_v26 = vmul.f32 %v3462_v29, %v3462_v29 }
 0xf24   :  { %2133 = vadd.xlane.f32.xlu1 %v2130_v26 }
 0xf8d   :  { %v2124_v37 = vpop.xlane.xlu1 %2123 }
 0xf8e   :  { %v2127_v38 = vmul.f32 0.015625, %v2124_v37 }
 0xf8f   :  { %v2132_v33 = vpop.xlane.xlu0 %2131 }
 0xf90   :  { %v2137_v41 = vmul.f32 %v2127_v38, %v2127_v38  ;;  %v2135_v49 = vmul.f32 0.015625, %v2132_v33  ;;  %v2143_v46 = vsub.f32 %v3457_v21, %v2127_v38 }
 0xf92   :  { %v2139_v50 = vsub.f32 %v2135_v49, %v2137_v41 }
 0xf94   :  { %v2141_v52 = vmax.f32 %v2139_v50, 0.0 }
 0xf95   :  { %v2126_v40 = vpop.xlane.xlu2 %2125 }
 0xf96   :  { %v2145_v43 = vadd.f32 1e-05, %v2141_v52  ;;  %v2128_v42 = vmul.f32 0.015625, %v2126_v40 }
 0xf97   :  { %v2134_v44 = vpop.xlane.xlu1 %2133 }
 0xf98   :  { %3071 = vrsqrt.f32 %v2145_v43  ;;  %v2138_v48 = vmul.f32 %v2128_v42, %v2128_v42  ;;  %v2136_v53 = vmul.f32 0.015625, %v2134_v44  ;;  %vm2153_vm1 = vweird.f32 %v2145_v43 }
 0xf99   :  { %v2144_v1 = vsub.f32 %v3462_v29, %v2128_v42 }
 0xf9a   :  { %v2140_v55 = vsub.f32 %v2136_v53, %v2138_v48 }
 0xf9c   :  { %v2142_v56 = vmax.f32 %v2140_v55, 0.0 }
 0xf9e   :  { %v3072_v47 = vpop.eup %3071  ;;  %v2146_v59 = vadd.f32 1e-05, %v2142_v56 }
 0xf9f   :  { %v2148_v58 = vmul.f32 %v3072_v47, %v2145_v43  ;;  %vm2154_vm15 = vweird.f32 %v3072_v47 }
 0xfa0   :  { %3073 = vrsqrt.f32 %v2146_v59  ;;  %vm2155_vm2 = vmor %vm2153_vm1, %vm2154_vm15  ;;  %vm2163_vm0 = vweird.f32 %v2146_v59 }
 0xfa1   :  { %v2149_v60 = vmul.f32 %v3072_v47, %v2148_v58 }
 0xfa3   :  { %v2150_v0 = vmul.f32 0.5, %v2149_v60 }
 0xfa5   :  { %v2151_v62 = vsub.f32 1.5, %v2150_v0 }
 0xfa6   :  { %v3074_v4 = vpop.eup %3073 }
 0xfa7   :  { %v2152_v57 = vmul.f32 %v3072_v47, %v2151_v62  ;;  %v2158_v5 = vmul.f32 %v3074_v4, %v2146_v59  ;;  %vm2164_vm3 = vweird.f32 %v3074_v4 }
 0xfa8   :  { %vm2165_vm4 = vmor %vm2163_vm0, %vm2164_vm3 }
 0xfa9   :  { %v2159_v6 = vmul.f32 %v3074_v4, %v2158_v5  ;;  %v2156_v7 = vsel %vm2155_vm2, %v3072_v47, %v2152_v57 }
 0xfaa   :  { %v2167_v9 = vmul.f32 %v2156_v7, %v2143_v46 }
 0xfab   :  { %v2160_v32 = vmul.f32 0.5, %v2159_v6 }
 0xfac   :  { %v2170_v2 = vmul.f32 %v2984_v54, %v2167_v9 }
 0xfad   :  { %v2161_v8 = vsub.f32 1.5, %v2160_v32 }
 0xfae   :  { %v2173_v12 = vadd.f32 %v2985_v10, %v2170_v2 }
 0xfaf   :  { %v2162_v61 = vmul.f32 %v3074_v4, %v2161_v8 }
 0xfb1   :  { %v2166_v63 = vsel %vm2165_vm4, %v3074_v4, %v2162_v61 }
 0xfb2   :  { %v2168_v3 = vmul.f32 %v2166_v63, %v2144_v1 }
 0xfb4   :  { %v2171_v11 = vmul.f32 %v2984_v54, %v2168_v3 }
 0xfb6   :  { %v2174_v13 = vadd.f32 %v2985_v10, %v2171_v11 }
 0xfb8   :  { %v2175_v14 = vpack.c.bf16 %v2174_v13, %v2173_v12 }
 0xfba   :  { %2250 = vmatmul.bf16.vlgmr.msrb.gmra.mxu2 %v2175_v14 }
0x103d   :  { %v2251_v17 = vpop.f32.mrf.mxu2 }
0x103e   :  { %v2252_v23 = vadd.f32 %v2986_v15, %v2251_v17 }
0x1040   :  { %2256 = vst [vmem:[%s3488_s4] sm:$0xff] %v2252_v23 }
0x1045   :  { %v2253_v16 = vpop.f32.mrf.mxu2 }
0x1046   :  { %v2254_v18 = vadd.f32 %v2986_v15, %v2253_v16 }
0x1048   :  { %2257 = vst [vmem:[%s3488_s4 + $0x8] sm:$0xff] %v2254_v18 }
0x1049   :  { %2262 = vsyncpa [#allocation3], 1 }

</bundles_post_ra>
